<compile_context>
chip_gen: v5e
topology: v5e:2x2
jax: 0.10.0
libtpu: 0.0.40
codegen_flags: <defaults>
</compile_context>

<pallas_src>
import math

import jax
import jax.numpy as jnp
from jax.experimental import pallas as pl
from jax.experimental.pallas import tpu as pltpu


# ------------------------------------------------------------------ fused kernel

def _make_fused_gru_kernel(L, T, B, D, H):
    """Fused L-layer GRU + last-step Linear head. Refs: (x, w_slab, misc_slab, out)."""
    G = 3 * H

    def kernel(x_ref, w_ref, misc_ref, out_ref):
        # ---- unpack weight slab once (H=16 -> ~11 vregs; see scaling guardrail above) ----
        wi0 = w_ref[0:D, :]                                   # (D, 3H) layer-0 input weights
        layer_w = [(None, w_ref[D:D + H, :])]                 # layer 0: only recurrent weights
        for l in range(1, L):
            base = D + (2 * l - 1) * H
            layer_w.append((w_ref[base:base + H, :],          # wi_l (H, 3H)
                            w_ref[base + H:base + 2 * H, :])) # wh_l (H, 3H)

        # ---- unpack pre-folded biases + FC head ----
        misc = misc_ref[...]                                  # (L+1, 4H)
        layer_b = []
        for l in range(L):
            b_rz = misc[l:l + 1, 0:2 * H]                     # (1, 2H) = b_ir|b_iz + b_hr|b_hz
            b_ni = misc[l:l + 1, 2 * H:3 * H]                 # (1, H)  = b_in
            b_nh = misc[l:l + 1, 3 * H:4 * H]                 # (1, H)  = b_hn
            layer_b.append((b_rz, b_ni, b_nh))
        fc_w = misc[L:L + 1, 0:H]                             # (1, H)
        fc_b = misc[L:L + 1, H:H + 1]                         # (1, 1)

        # ---- hoisted layer-0 input projection: one (B*T, D) @ (D, 3H) MXU dot ----
        x_flat = x_ref[...].reshape(B * T, D)
        gi0 = jnp.dot(x_flat, wi0,
                      preferred_element_type=jnp.float32).reshape(B, T, G)

        # ---- recurrence (fully unrolled; PyTorch GRU h0 = zeros) ----
        hs = [jnp.zeros((B, H), jnp.float32) for _ in range(L)]
        for t in range(T):
            x_in = None
            for l in range(L):
                wi, wh = layer_w[l]
                b_rz, b_ni, b_nh = layer_b[l]
                h = hs[l]
                if l == 0:
                    gi = gi0[:, t, :]                                          # (B, 3H)
                else:
                    gi = jnp.dot(x_in, wi, preferred_element_type=jnp.float32)
                gh = jnp.dot(h, wh, preferred_element_type=jnp.float32)       # (B, 3H)

                # Fused r/z gates: single EUP push over 2H lanes, tanh-form sigmoid.
                pre_rz = gi[:, 0:2 * H] + gh[:, 0:2 * H] + b_rz
                rz = 0.5 * (jnp.tanh(0.5 * pre_rz) + 1.0)
                r = rz[:, 0:H]
                z = rz[:, H:2 * H]
                # n gate: b_in outside, b_hn inside r*(...) -- matches PyTorch.
                n = jnp.tanh(gi[:, 2 * H:G] + b_ni + r * (gh[:, 2 * H:G] + b_nh))
                h_new = (1.0 - z) * n + z * h
                hs[l] = h_new
                x_in = h_new

        # Final head: dropout(eval) = identity; Linear(H, 1) as a lane reduction.
        h_last = hs[L - 1]                                    # == gru_out[:, -1, :]
        out = jnp.sum(h_last * fc_w, axis=-1, keepdims=True) + fc_b
        out_ref[...] = out.astype(out_ref.dtype)

    return kernel


# ------------------------------------------------------------------ param packing (one-time)

def prepare_params(gru_params, fc_w, fc_b):
    """Pack PyTorch-layout GRU params + FC head into TWO slabs, once (not per forward).

    PyTorch per layer: w_ih (3H, Din), w_hh (3H, H), b_ih (3H,), b_hh (3H,)
    Weight slab rows:  [wi0 (D) | wh0 (H) | wi1 (H) | wh1 (H) | ... ]  each block (rows, 3H)
    Misc slab rows:    layer l -> [b_ih[:2H]+b_hh[:2H] | b_in | b_hn]  (4H wide)
                       row L   -> [fc_w (H) | fc_b (1) | zero pad]
    """
    L = len(gru_params)
    H = gru_params[0][1].shape[1]

    w_blocks = [jnp.transpose(gru_params[0][0]).astype(jnp.float32)]        # wi0 (D, 3H)
    w_blocks.append(jnp.transpose(gru_params[0][1]).astype(jnp.float32))    # wh0 (H, 3H)
    for l in range(1, L):
        w_blocks.append(jnp.transpose(gru_params[l][0]).astype(jnp.float32))  # wi_l
        w_blocks.append(jnp.transpose(gru_params[l][1]).astype(jnp.float32))  # wh_l
    w_slab = jnp.concatenate(w_blocks, axis=0)                              # (D+(2L-1)H, 3H)

    misc_rows = []
    for (_, _, b_ih, b_hh) in gru_params:
        b_rz = b_ih[:2 * H] + b_hh[:2 * H]
        b_ni = b_ih[2 * H:3 * H]
        b_nh = b_hh[2 * H:3 * H]
        misc_rows.append(jnp.concatenate([b_rz, b_ni, b_nh])[None, :])      # (1, 4H)
    fc_row = jnp.concatenate([fc_w.reshape(-1), fc_b.reshape(-1),
                              jnp.zeros((4 * H - H - 1,), jnp.float32)])[None, :]
    misc_rows.append(fc_row)
    misc_slab = jnp.concatenate(misc_rows, axis=0).astype(jnp.float32)      # (L+1, 4H)

    return w_slab, misc_slab


# ------------------------------------------------------------------ module wrapper

@jax.jit
def gru_regressor_forward(x, packed):
    """x: (B, T, D) batch_first (no wrapper-side transpose). Returns (B,) == output.view(-1)."""
    w_slab, misc_slab = packed
    B, T, D = x.shape
    H = misc_slab.shape[1] // 4
    L = misc_slab.shape[0] - 1

    vmem = pl.BlockSpec(memory_space=pltpu.MemorySpace.VMEM)
    out = pl.pallas_call(
        _make_fused_gru_kernel(L, T, B, D, H),
        out_shape=jax.ShapeDtypeStruct((B, 1), jnp.float32),
        in_specs=[vmem, vmem, vmem],
        out_specs=vmem,
    )(x, w_slab, misc_slab)
    return out.reshape(-1)


# ------------------------------------------------------------------ params + pure-JAX reference

def init_params(key, input_dim, hidden_dim, num_layers):
    k = 1.0 / math.sqrt(hidden_dim)
    params = []
    for layer in range(num_layers):
        d = input_dim if layer == 0 else hidden_dim
        key, k1, k2, k3, k4 = jax.random.split(key, 5)
        w_ih = jax.random.uniform(k1, (3 * hidden_dim, d), jnp.float32, -k, k)
        w_hh = jax.random.uniform(k2, (3 * hidden_dim, hidden_dim), jnp.float32, -k, k)
        b_ih = jax.random.uniform(k3, (3 * hidden_dim,), jnp.float32, -k, k)
        b_hh = jax.random.uniform(k4, (3 * hidden_dim,), jnp.float32, -k, k)
        params.append((w_ih, w_hh, b_ih, b_hh))
    key, k1, k2 = jax.random.split(key, 3)
    fc_w = jax.random.uniform(k1, (1, hidden_dim), jnp.float32, -k, k)
    fc_b = jax.random.uniform(k2, (1,), jnp.float32, -k, k)
    return params, fc_w, fc_b


def reference_forward(x, gru_params, fc_w, fc_b):
    h_seq = x  # (B, T, D)
    for (w_ih, w_hh, b_ih, b_hh) in gru_params:
        B = h_seq.shape[0]
        H = w_hh.shape[1]
        w_ir, w_iz, w_in = jnp.split(w_ih, 3, axis=0)
        w_hr, w_hz, w_hn = jnp.split(w_hh, 3, axis=0)
        b_ir, b_iz, b_in_ = jnp.split(b_ih, 3)
        b_hr, b_hz, b_hn = jnp.split(b_hh, 3)

        def step(h, xt):
            r = jax.nn.sigmoid(xt @ w_ir.T + h @ w_hr.T + b_ir + b_hr)
            z = jax.nn.sigmoid(xt @ w_iz.T + h @ w_hz.T + b_iz + b_hz)
            n = jnp.tanh(xt @ w_in.T + b_in_ + r * (h @ w_hn.T + b_hn))
            h_new = (1.0 - z) * n + z * h
            return h_new, h_new

        h0 = jnp.zeros((B, H), jnp.float32)
        _, ys = jax.lax.scan(step, h0, jnp.transpose(h_seq, (1, 0, 2)))
        h_seq = jnp.transpose(ys, (1, 0, 2))
    last = h_seq[:, -1, :]
    return (last @ fc_w.T + fc_b).reshape(-1)


# ------------------------------------------------------------------ main

if __name__ == "__main__":
    B, T, D = 2, 8, 8            # batch, sequence length, input_dim
    H, L = 16, 3                 # hidden_dim=16, num_layers=3 (script globals)

    key = jax.random.PRNGKey(0)
    key, xk = jax.random.split(key)
    x = jax.random.normal(xk, (B, T, D), jnp.float32)

    gru_params, fc_w, fc_b = init_params(key, D, H, L)
    packed = prepare_params(gru_params, fc_w, fc_b)

    out = gru_regressor_forward(x, packed)
    out = jax.block_until_ready(out)

    ref = reference_forward(x, gru_params, fc_w, fc_b)
    assert out.shape == (B,)
    assert jnp.allclose(out, ref, atol=1e-4, rtol=1e-4), (out, ref)

    print("KERNEL_OK")
</pallas_src>

<mosaic_0001>
module attributes {stable_mosaic.version = 11 : i64} {
  func.func @kernel(%arg0: memref<2x8x8xf32, #tpu.memory_space<vmem>>, %arg1: memref<88x48xf32, #tpu.memory_space<vmem>>, %arg2: memref<4x64xf32, #tpu.memory_space<vmem>>, %arg3: memref<2x1xf32, #tpu.memory_space<vmem>>) attributes {dimension_semantics = [], scalar_prefetch = 0 : i64, scratch_operands = 0 : i64, tpu.core_type = #tpu.core_type<tc>} {
    %c0 = arith.constant 0 : index
    %c0_0 = arith.constant 0 : index
    %0 = vector.load %arg1[%c0, %c0_0] : memref<88x48xf32, #tpu.memory_space<vmem>>, vector<8x48xf32>
    %c8 = arith.constant 8 : index
    %c0_1 = arith.constant 0 : index
    %1 = vector.load %arg1[%c8, %c0_1] : memref<88x48xf32, #tpu.memory_space<vmem>>, vector<16x48xf32>
    %c24 = arith.constant 24 : index
    %c0_2 = arith.constant 0 : index
    %2 = vector.load %arg1[%c24, %c0_2] : memref<88x48xf32, #tpu.memory_space<vmem>>, vector<16x48xf32>
    %c40 = arith.constant 40 : index
    %c0_3 = arith.constant 0 : index
    %3 = vector.load %arg1[%c40, %c0_3] : memref<88x48xf32, #tpu.memory_space<vmem>>, vector<16x48xf32>
    %c56 = arith.constant 56 : index
    %c0_4 = arith.constant 0 : index
    %4 = vector.load %arg1[%c56, %c0_4] : memref<88x48xf32, #tpu.memory_space<vmem>>, vector<16x48xf32>
    %c72 = arith.constant 72 : index
    %c0_5 = arith.constant 0 : index
    %5 = vector.load %arg1[%c72, %c0_5] : memref<88x48xf32, #tpu.memory_space<vmem>>, vector<16x48xf32>
    %c0_6 = arith.constant 0 : index
    %c0_7 = arith.constant 0 : index
    %6 = vector.load %arg2[%c0_6, %c0_7] : memref<4x64xf32, #tpu.memory_space<vmem>>, vector<4x64xf32>
    %7 = vector.extract_strided_slice %6 {offsets = [0, 0], sizes = [1, 32], strides = [1, 1]} : vector<4x64xf32> to vector<1x32xf32>
    %8 = vector.extract_strided_slice %6 {offsets = [0, 32], sizes = [1, 16], strides = [1, 1]} : vector<4x64xf32> to vector<1x16xf32>
    %9 = vector.extract_strided_slice %6 {offsets = [0, 48], sizes = [1, 16], strides = [1, 1]} : vector<4x64xf32> to vector<1x16xf32>
    %10 = vector.extract_strided_slice %6 {offsets = [1, 0], sizes = [1, 32], strides = [1, 1]} : vector<4x64xf32> to vector<1x32xf32>
    %11 = vector.extract_strided_slice %6 {offsets = [1, 32], sizes = [1, 16], strides = [1, 1]} : vector<4x64xf32> to vector<1x16xf32>
    %12 = vector.extract_strided_slice %6 {offsets = [1, 48], sizes = [1, 16], strides = [1, 1]} : vector<4x64xf32> to vector<1x16xf32>
    %13 = vector.extract_strided_slice %6 {offsets = [2, 0], sizes = [1, 32], strides = [1, 1]} : vector<4x64xf32> to vector<1x32xf32>
    %14 = vector.extract_strided_slice %6 {offsets = [2, 32], sizes = [1, 16], strides = [1, 1]} : vector<4x64xf32> to vector<1x16xf32>
    %15 = vector.extract_strided_slice %6 {offsets = [2, 48], sizes = [1, 16], strides = [1, 1]} : vector<4x64xf32> to vector<1x16xf32>
    %16 = vector.extract_strided_slice %6 {offsets = [3, 0], sizes = [1, 16], strides = [1, 1]} : vector<4x64xf32> to vector<1x16xf32>
    %17 = vector.extract_strided_slice %6 {offsets = [3, 16], sizes = [1, 1], strides = [1, 1]} : vector<4x64xf32> to vector<1x1xf32>
    %c0_8 = arith.constant 0 : index
    %c0_9 = arith.constant 0 : index
    %c0_10 = arith.constant 0 : index
    %18 = vector.load %arg0[%c0_8, %c0_9, %c0_10] : memref<2x8x8xf32, #tpu.memory_space<vmem>>, vector<2x8x8xf32>
    %19 = vector.shape_cast %18 : vector<2x8x8xf32> to vector<16x8xf32>
    %cst = arith.constant dense<0.000000e+00> : vector<16x48xf32>
    %20 = tpu.matmul %19, %0, %cst {dimension_numbers = #tpu.dot_dimension_numbers<[1], [0], [0], [1], [0, 0, 1, 1], [], []>} : vector<16x8xf32>, vector<8x48xf32>, vector<16x48xf32> -> vector<16x48xf32>
    %21 = vector.shape_cast %20 : vector<16x48xf32> to vector<2x8x48xf32>
    %cst_11 = arith.constant 0.000000e+00 : f32
    %22 = vector.broadcast %cst_11 : f32 to vector<2x16xf32>
    %cst_12 = arith.constant 0.000000e+00 : f32
    %23 = vector.broadcast %cst_12 : f32 to vector<2x16xf32>
    %cst_13 = arith.constant 0.000000e+00 : f32
    %24 = vector.broadcast %cst_13 : f32 to vector<2x16xf32>
    %25 = vector.extract_strided_slice %21 {offsets = [0, 0, 0], sizes = [2, 1, 48], strides = [1, 1, 1]} : vector<2x8x48xf32> to vector<2x1x48xf32>
    %26 = vector.shape_cast %25 : vector<2x1x48xf32> to vector<2x48xf32>
    %cst_14 = arith.constant dense<0.000000e+00> : vector<2x48xf32>
    %27 = tpu.matmul %22, %1, %cst_14 {dimension_numbers = #tpu.dot_dimension_numbers<[1], [0], [0], [1], [0, 0, 1, 1], [], []>} : vector<2x16xf32>, vector<16x48xf32>, vector<2x48xf32> -> vector<2x48xf32>
    %28 = vector.extract_strided_slice %26 {offsets = [0, 0], sizes = [2, 32], strides = [1, 1]} : vector<2x48xf32> to vector<2x32xf32>
    %29 = vector.extract_strided_slice %27 {offsets = [0, 0], sizes = [2, 32], strides = [1, 1]} : vector<2x48xf32> to vector<2x32xf32>
    %30 = arith.addf %28, %29 : vector<2x32xf32>
    %31 = vector.broadcast %7 : vector<1x32xf32> to vector<2x32xf32>
    %32 = arith.addf %30, %31 : vector<2x32xf32>
    %cst_15 = arith.constant 5.000000e-01 : f32
    %33 = vector.broadcast %cst_15 : f32 to vector<2x32xf32>
    %34 = arith.mulf %33, %32 : vector<2x32xf32>
    %35 = math.tanh %34 : vector<2x32xf32>
    %cst_16 = arith.constant 1.000000e+00 : f32
    %36 = vector.broadcast %cst_16 : f32 to vector<2x32xf32>
    %37 = arith.addf %35, %36 : vector<2x32xf32>
    %cst_17 = arith.constant 5.000000e-01 : f32
    %38 = vector.broadcast %cst_17 : f32 to vector<2x32xf32>
    %39 = arith.mulf %38, %37 : vector<2x32xf32>
    %40 = vector.extract_strided_slice %39 {offsets = [0, 0], sizes = [2, 16], strides = [1, 1]} : vector<2x32xf32> to vector<2x16xf32>
    %41 = vector.extract_strided_slice %39 {offsets = [0, 16], sizes = [2, 16], strides = [1, 1]} : vector<2x32xf32> to vector<2x16xf32>
    %42 = vector.extract_strided_slice %26 {offsets = [0, 32], sizes = [2, 16], strides = [1, 1]} : vector<2x48xf32> to vector<2x16xf32>
    %43 = vector.broadcast %8 : vector<1x16xf32> to vector<2x16xf32>
    %44 = arith.addf %42, %43 : vector<2x16xf32>
    %45 = vector.extract_strided_slice %27 {offsets = [0, 32], sizes = [2, 16], strides = [1, 1]} : vector<2x48xf32> to vector<2x16xf32>
    %46 = vector.broadcast %9 : vector<1x16xf32> to vector<2x16xf32>
    %47 = arith.addf %45, %46 : vector<2x16xf32>
    %48 = arith.mulf %40, %47 : vector<2x16xf32>
    %49 = arith.addf %44, %48 : vector<2x16xf32>
    %50 = math.tanh %49 : vector<2x16xf32>
    %cst_18 = arith.constant 1.000000e+00 : f32
    %51 = vector.broadcast %cst_18 : f32 to vector<2x16xf32>
    %52 = arith.subf %51, %41 : vector<2x16xf32>
    %53 = arith.mulf %52, %50 : vector<2x16xf32>
    %54 = arith.mulf %41, %22 : vector<2x16xf32>
    %55 = arith.addf %53, %54 : vector<2x16xf32>
    %cst_19 = arith.constant dense<0.000000e+00> : vector<2x48xf32>
    %56 = tpu.matmul %55, %2, %cst_19 {dimension_numbers = #tpu.dot_dimension_numbers<[1], [0], [0], [1], [0, 0, 1, 1], [], []>} : vector<2x16xf32>, vector<16x48xf32>, vector<2x48xf32> -> vector<2x48xf32>
    %cst_20 = arith.constant dense<0.000000e+00> : vector<2x48xf32>
    %57 = tpu.matmul %23, %3, %cst_20 {dimension_numbers = #tpu.dot_dimension_numbers<[1], [0], [0], [1], [0, 0, 1, 1], [], []>} : vector<2x16xf32>, vector<16x48xf32>, vector<2x48xf32> -> vector<2x48xf32>
    %58 = vector.extract_strided_slice %56 {offsets = [0, 0], sizes = [2, 32], strides = [1, 1]} : vector<2x48xf32> to vector<2x32xf32>
    %59 = vector.extract_strided_slice %57 {offsets = [0, 0], sizes = [2, 32], strides = [1, 1]} : vector<2x48xf32> to vector<2x32xf32>
    %60 = arith.addf %58, %59 : vector<2x32xf32>
    %61 = vector.broadcast %10 : vector<1x32xf32> to vector<2x32xf32>
    %62 = arith.addf %60, %61 : vector<2x32xf32>
    %cst_21 = arith.constant 5.000000e-01 : f32
    %63 = vector.broadcast %cst_21 : f32 to vector<2x32xf32>
    %64 = arith.mulf %63, %62 : vector<2x32xf32>
    %65 = math.tanh %64 : vector<2x32xf32>
    %cst_22 = arith.constant 1.000000e+00 : f32
    %66 = vector.broadcast %cst_22 : f32 to vector<2x32xf32>
    %67 = arith.addf %65, %66 : vector<2x32xf32>
    %cst_23 = arith.constant 5.000000e-01 : f32
    %68 = vector.broadcast %cst_23 : f32 to vector<2x32xf32>
    %69 = arith.mulf %68, %67 : vector<2x32xf32>
    %70 = vector.extract_strided_slice %69 {offsets = [0, 0], sizes = [2, 16], strides = [1, 1]} : vector<2x32xf32> to vector<2x16xf32>
    %71 = vector.extract_strided_slice %69 {offsets = [0, 16], sizes = [2, 16], strides = [1, 1]} : vector<2x32xf32> to vector<2x16xf32>
    %72 = vector.extract_strided_slice %56 {offsets = [0, 32], sizes = [2, 16], strides = [1, 1]} : vector<2x48xf32> to vector<2x16xf32>
    %73 = vector.broadcast %11 : vector<1x16xf32> to vector<2x16xf32>
    %74 = arith.addf %72, %73 : vector<2x16xf32>
    %75 = vector.extract_strided_slice %57 {offsets = [0, 32], sizes = [2, 16], strides = [1, 1]} : vector<2x48xf32> to vector<2x16xf32>
    %76 = vector.broadcast %12 : vector<1x16xf32> to vector<2x16xf32>
    %77 = arith.addf %75, %76 : vector<2x16xf32>
    %78 = arith.mulf %70, %77 : vector<2x16xf32>
    %79 = arith.addf %74, %78 : vector<2x16xf32>
    %80 = math.tanh %79 : vector<2x16xf32>
    %cst_24 = arith.constant 1.000000e+00 : f32
    %81 = vector.broadcast %cst_24 : f32 to vector<2x16xf32>
    %82 = arith.subf %81, %71 : vector<2x16xf32>
    %83 = arith.mulf %82, %80 : vector<2x16xf32>
    %84 = arith.mulf %71, %23 : vector<2x16xf32>
    %85 = arith.addf %83, %84 : vector<2x16xf32>
    %cst_25 = arith.constant dense<0.000000e+00> : vector<2x48xf32>
    %86 = tpu.matmul %85, %4, %cst_25 {dimension_numbers = #tpu.dot_dimension_numbers<[1], [0], [0], [1], [0, 0, 1, 1], [], []>} : vector<2x16xf32>, vector<16x48xf32>, vector<2x48xf32> -> vector<2x48xf32>
    %cst_26 = arith.constant dense<0.000000e+00> : vector<2x48xf32>
    %87 = tpu.matmul %24, %5, %cst_26 {dimension_numbers = #tpu.dot_dimension_numbers<[1], [0], [0], [1], [0, 0, 1, 1], [], []>} : vector<2x16xf32>, vector<16x48xf32>, vector<2x48xf32> -> vector<2x48xf32>
    %88 = vector.extract_strided_slice %86 {offsets = [0, 0], sizes = [2, 32], strides = [1, 1]} : vector<2x48xf32> to vector<2x32xf32>
    %89 = vector.extract_strided_slice %87 {offsets = [0, 0], sizes = [2, 32], strides = [1, 1]} : vector<2x48xf32> to vector<2x32xf32>
    %90 = arith.addf %88, %89 : vector<2x32xf32>
    %91 = vector.broadcast %13 : vector<1x32xf32> to vector<2x32xf32>
    %92 = arith.addf %90, %91 : vector<2x32xf32>
    %cst_27 = arith.constant 5.000000e-01 : f32
    %93 = vector.broadcast %cst_27 : f32 to vector<2x32xf32>
    %94 = arith.mulf %93, %92 : vector<2x32xf32>
    %95 = math.tanh %94 : vector<2x32xf32>
    %cst_28 = arith.constant 1.000000e+00 : f32
    %96 = vector.broadcast %cst_28 : f32 to vector<2x32xf32>
    %97 = arith.addf %95, %96 : vector<2x32xf32>
    %cst_29 = arith.constant 5.000000e-01 : f32
    %98 = vector.broadcast %cst_29 : f32 to vector<2x32xf32>
    %99 = arith.mulf %98, %97 : vector<2x32xf32>
    %100 = vector.extract_strided_slice %99 {offsets = [0, 0], sizes = [2, 16], strides = [1, 1]} : vector<2x32xf32> to vector<2x16xf32>
    %101 = vector.extract_strided_slice %99 {offsets = [0, 16], sizes = [2, 16], strides = [1, 1]} : vector<2x32xf32> to vector<2x16xf32>
    %102 = vector.extract_strided_slice %86 {offsets = [0, 32], sizes = [2, 16], strides = [1, 1]} : vector<2x48xf32> to vector<2x16xf32>
    %103 = vector.broadcast %14 : vector<1x16xf32> to vector<2x16xf32>
    %104 = arith.addf %102, %103 : vector<2x16xf32>
    %105 = vector.extract_strided_slice %87 {offsets = [0, 32], sizes = [2, 16], strides = [1, 1]} : vector<2x48xf32> to vector<2x16xf32>
    %106 = vector.broadcast %15 : vector<1x16xf32> to vector<2x16xf32>
    %107 = arith.addf %105, %106 : vector<2x16xf32>
    %108 = arith.mulf %100, %107 : vector<2x16xf32>
    %109 = arith.addf %104, %108 : vector<2x16xf32>
    %110 = math.tanh %109 : vector<2x16xf32>
    %cst_30 = arith.constant 1.000000e+00 : f32
    %111 = vector.broadcast %cst_30 : f32 to vector<2x16xf32>
    %112 = arith.subf %111, %101 : vector<2x16xf32>
    %113 = arith.mulf %112, %110 : vector<2x16xf32>
    %114 = arith.mulf %101, %24 : vector<2x16xf32>
    %115 = arith.addf %113, %114 : vector<2x16xf32>
    %116 = vector.extract_strided_slice %21 {offsets = [0, 1, 0], sizes = [2, 1, 48], strides = [1, 1, 1]} : vector<2x8x48xf32> to vector<2x1x48xf32>
    %117 = vector.shape_cast %116 : vector<2x1x48xf32> to vector<2x48xf32>
    %cst_31 = arith.constant dense<0.000000e+00> : vector<2x48xf32>
    %118 = tpu.matmul %55, %1, %cst_31 {dimension_numbers = #tpu.dot_dimension_numbers<[1], [0], [0], [1], [0, 0, 1, 1], [], []>} : vector<2x16xf32>, vector<16x48xf32>, vector<2x48xf32> -> vector<2x48xf32>
    %119 = vector.extract_strided_slice %117 {offsets = [0, 0], sizes = [2, 32], strides = [1, 1]} : vector<2x48xf32> to vector<2x32xf32>
    %120 = vector.extract_strided_slice %118 {offsets = [0, 0], sizes = [2, 32], strides = [1, 1]} : vector<2x48xf32> to vector<2x32xf32>
    %121 = arith.addf %119, %120 : vector<2x32xf32>
    %122 = vector.broadcast %7 : vector<1x32xf32> to vector<2x32xf32>
    %123 = arith.addf %121, %122 : vector<2x32xf32>
    %cst_32 = arith.constant 5.000000e-01 : f32
    %124 = vector.broadcast %cst_32 : f32 to vector<2x32xf32>
    %125 = arith.mulf %124, %123 : vector<2x32xf32>
    %126 = math.tanh %125 : vector<2x32xf32>
    %cst_33 = arith.constant 1.000000e+00 : f32
    %127 = vector.broadcast %cst_33 : f32 to vector<2x32xf32>
    %128 = arith.addf %126, %127 : vector<2x32xf32>
    %cst_34 = arith.constant 5.000000e-01 : f32
    %129 = vector.broadcast %cst_34 : f32 to vector<2x32xf32>
    %130 = arith.mulf %129, %128 : vector<2x32xf32>
    %131 = vector.extract_strided_slice %130 {offsets = [0, 0], sizes = [2, 16], strides = [1, 1]} : vector<2x32xf32> to vector<2x16xf32>
    %132 = vector.extract_strided_slice %130 {offsets = [0, 16], sizes = [2, 16], strides = [1, 1]} : vector<2x32xf32> to vector<2x16xf32>
    %133 = vector.extract_strided_slice %117 {offsets = [0, 32], sizes = [2, 16], strides = [1, 1]} : vector<2x48xf32> to vector<2x16xf32>
    %134 = vector.broadcast %8 : vector<1x16xf32> to vector<2x16xf32>
    %135 = arith.addf %133, %134 : vector<2x16xf32>
    %136 = vector.extract_strided_slice %118 {offsets = [0, 32], sizes = [2, 16], strides = [1, 1]} : vector<2x48xf32> to vector<2x16xf32>
    %137 = vector.broadcast %9 : vector<1x16xf32> to vector<2x16xf32>
    %138 = arith.addf %136, %137 : vector<2x16xf32>
    %139 = arith.mulf %131, %138 : vector<2x16xf32>
    %140 = arith.addf %135, %139 : vector<2x16xf32>
    %141 = math.tanh %140 : vector<2x16xf32>
    %cst_35 = arith.constant 1.000000e+00 : f32
    %142 = vector.broadcast %cst_35 : f32 to vector<2x16xf32>
    %143 = arith.subf %142, %132 : vector<2x16xf32>
    %144 = arith.mulf %143, %141 : vector<2x16xf32>
    %145 = arith.mulf %132, %55 : vector<2x16xf32>
    %146 = arith.addf %144, %145 : vector<2x16xf32>
    %cst_36 = arith.constant dense<0.000000e+00> : vector<2x48xf32>
    %147 = tpu.matmul %146, %2, %cst_36 {dimension_numbers = #tpu.dot_dimension_numbers<[1], [0], [0], [1], [0, 0, 1, 1], [], []>} : vector<2x16xf32>, vector<16x48xf32>, vector<2x48xf32> -> vector<2x48xf32>
    %cst_37 = arith.constant dense<0.000000e+00> : vector<2x48xf32>
    %148 = tpu.matmul %85, %3, %cst_37 {dimension_numbers = #tpu.dot_dimension_numbers<[1], [0], [0], [1], [0, 0, 1, 1], [], []>} : vector<2x16xf32>, vector<16x48xf32>, vector<2x48xf32> -> vector<2x48xf32>
    %149 = vector.extract_strided_slice %147 {offsets = [0, 0], sizes = [2, 32], strides = [1, 1]} : vector<2x48xf32> to vector<2x32xf32>
    %150 = vector.extract_strided_slice %148 {offsets = [0, 0], sizes = [2, 32], strides = [1, 1]} : vector<2x48xf32> to vector<2x32xf32>
    %151 = arith.addf %149, %150 : vector<2x32xf32>
    %152 = vector.broadcast %10 : vector<1x32xf32> to vector<2x32xf32>
    %153 = arith.addf %151, %152 : vector<2x32xf32>
    %cst_38 = arith.constant 5.000000e-01 : f32
    %154 = vector.broadcast %cst_38 : f32 to vector<2x32xf32>
    %155 = arith.mulf %154, %153 : vector<2x32xf32>
    %156 = math.tanh %155 : vector<2x32xf32>
    %cst_39 = arith.constant 1.000000e+00 : f32
    %157 = vector.broadcast %cst_39 : f32 to vector<2x32xf32>
    %158 = arith.addf %156, %157 : vector<2x32xf32>
    %cst_40 = arith.constant 5.000000e-01 : f32
    %159 = vector.broadcast %cst_40 : f32 to vector<2x32xf32>
    %160 = arith.mulf %159, %158 : vector<2x32xf32>
    %161 = vector.extract_strided_slice %160 {offsets = [0, 0], sizes = [2, 16], strides = [1, 1]} : vector<2x32xf32> to vector<2x16xf32>
    %162 = vector.extract_strided_slice %160 {offsets = [0, 16], sizes = [2, 16], strides = [1, 1]} : vector<2x32xf32> to vector<2x16xf32>
    %163 = vector.extract_strided_slice %147 {offsets = [0, 32], sizes = [2, 16], strides = [1, 1]} : vector<2x48xf32> to vector<2x16xf32>
    %164 = vector.broadcast %11 : vector<1x16xf32> to vector<2x16xf32>
    %165 = arith.addf %163, %164 : vector<2x16xf32>
    %166 = vector.extract_strided_slice %148 {offsets = [0, 32], sizes = [2, 16], strides = [1, 1]} : vector<2x48xf32> to vector<2x16xf32>
    %167 = vector.broadcast %12 : vector<1x16xf32> to vector<2x16xf32>
    %168 = arith.addf %166, %167 : vector<2x16xf32>
    %169 = arith.mulf %161, %168 : vector<2x16xf32>
    %170 = arith.addf %165, %169 : vector<2x16xf32>
    %171 = math.tanh %170 : vector<2x16xf32>
    %cst_41 = arith.constant 1.000000e+00 : f32
    %172 = vector.broadcast %cst_41 : f32 to vector<2x16xf32>
    %173 = arith.subf %172, %162 : vector<2x16xf32>
    %174 = arith.mulf %173, %171 : vector<2x16xf32>
    %175 = arith.mulf %162, %85 : vector<2x16xf32>
    %176 = arith.addf %174, %175 : vector<2x16xf32>
    %cst_42 = arith.constant dense<0.000000e+00> : vector<2x48xf32>
    %177 = tpu.matmul %176, %4, %cst_42 {dimension_numbers = #tpu.dot_dimension_numbers<[1], [0], [0], [1], [0, 0, 1, 1], [], []>} : vector<2x16xf32>, vector<16x48xf32>, vector<2x48xf32> -> vector<2x48xf32>
    %cst_43 = arith.constant dense<0.000000e+00> : vector<2x48xf32>
    %178 = tpu.matmul %115, %5, %cst_43 {dimension_numbers = #tpu.dot_dimension_numbers<[1], [0], [0], [1], [0, 0, 1, 1], [], []>} : vector<2x16xf32>, vector<16x48xf32>, vector<2x48xf32> -> vector<2x48xf32>
    %179 = vector.extract_strided_slice %177 {offsets = [0, 0], sizes = [2, 32], strides = [1, 1]} : vector<2x48xf32> to vector<2x32xf32>
    %180 = vector.extract_strided_slice %178 {offsets = [0, 0], sizes = [2, 32], strides = [1, 1]} : vector<2x48xf32> to vector<2x32xf32>
    %181 = arith.addf %179, %180 : vector<2x32xf32>
    %182 = vector.broadcast %13 : vector<1x32xf32> to vector<2x32xf32>
    %183 = arith.addf %181, %182 : vector<2x32xf32>
    %cst_44 = arith.constant 5.000000e-01 : f32
    %184 = vector.broadcast %cst_44 : f32 to vector<2x32xf32>
    %185 = arith.mulf %184, %183 : vector<2x32xf32>
    %186 = math.tanh %185 : vector<2x32xf32>
    %cst_45 = arith.constant 1.000000e+00 : f32
    %187 = vector.broadcast %cst_45 : f32 to vector<2x32xf32>
    %188 = arith.addf %186, %187 : vector<2x32xf32>
    %cst_46 = arith.constant 5.000000e-01 : f32
    %189 = vector.broadcast %cst_46 : f32 to vector<2x32xf32>
    %190 = arith.mulf %189, %188 : vector<2x32xf32>
    %191 = vector.extract_strided_slice %190 {offsets = [0, 0], sizes = [2, 16], strides = [1, 1]} : vector<2x32xf32> to vector<2x16xf32>
    %192 = vector.extract_strided_slice %190 {offsets = [0, 16], sizes = [2, 16], strides = [1, 1]} : vector<2x32xf32> to vector<2x16xf32>
    %193 = vector.extract_strided_slice %177 {offsets = [0, 32], sizes = [2, 16], strides = [1, 1]} : vector<2x48xf32> to vector<2x16xf32>
    %194 = vector.broadcast %14 : vector<1x16xf32> to vector<2x16xf32>
    %195 = arith.addf %193, %194 : vector<2x16xf32>
    %196 = vector.extract_strided_slice %178 {offsets = [0, 32], sizes = [2, 16], strides = [1, 1]} : vector<2x48xf32> to vector<2x16xf32>
    %197 = vector.broadcast %15 : vector<1x16xf32> to vector<2x16xf32>
    %198 = arith.addf %196, %197 : vector<2x16xf32>
    %199 = arith.mulf %191, %198 : vector<2x16xf32>
    %200 = arith.addf %195, %199 : vector<2x16xf32>
    %201 = math.tanh %200 : vector<2x16xf32>
    %cst_47 = arith.constant 1.000000e+00 : f32
    %202 = vector.broadcast %cst_47 : f32 to vector<2x16xf32>
    %203 = arith.subf %202, %192 : vector<2x16xf32>
    %204 = arith.mulf %203, %201 : vector<2x16xf32>
    %205 = arith.mulf %192, %115 : vector<2x16xf32>
    %206 = arith.addf %204, %205 : vector<2x16xf32>
    %207 = vector.extract_strided_slice %21 {offsets = [0, 2, 0], sizes = [2, 1, 48], strides = [1, 1, 1]} : vector<2x8x48xf32> to vector<2x1x48xf32>
    %208 = vector.shape_cast %207 : vector<2x1x48xf32> to vector<2x48xf32>
    %cst_48 = arith.constant dense<0.000000e+00> : vector<2x48xf32>
    %209 = tpu.matmul %146, %1, %cst_48 {dimension_numbers = #tpu.dot_dimension_numbers<[1], [0], [0], [1], [0, 0, 1, 1], [], []>} : vector<2x16xf32>, vector<16x48xf32>, vector<2x48xf32> -> vector<2x48xf32>
    %210 = vector.extract_strided_slice %208 {offsets = [0, 0], sizes = [2, 32], strides = [1, 1]} : vector<2x48xf32> to vector<2x32xf32>
    %211 = vector.extract_strided_slice %209 {offsets = [0, 0], sizes = [2, 32], strides = [1, 1]} : vector<2x48xf32> to vector<2x32xf32>
    %212 = arith.addf %210, %211 : vector<2x32xf32>
    %213 = vector.broadcast %7 : vector<1x32xf32> to vector<2x32xf32>
    %214 = arith.addf %212, %213 : vector<2x32xf32>
    %cst_49 = arith.constant 5.000000e-01 : f32
    %215 = vector.broadcast %cst_49 : f32 to vector<2x32xf32>
    %216 = arith.mulf %215, %214 : vector<2x32xf32>
    %217 = math.tanh %216 : vector<2x32xf32>
    %cst_50 = arith.constant 1.000000e+00 : f32
    %218 = vector.broadcast %cst_50 : f32 to vector<2x32xf32>
    %219 = arith.addf %217, %218 : vector<2x32xf32>
    %cst_51 = arith.constant 5.000000e-01 : f32
    %220 = vector.broadcast %cst_51 : f32 to vector<2x32xf32>
    %221 = arith.mulf %220, %219 : vector<2x32xf32>
    %222 = vector.extract_strided_slice %221 {offsets = [0, 0], sizes = [2, 16], strides = [1, 1]} : vector<2x32xf32> to vector<2x16xf32>
    %223 = vector.extract_strided_slice %221 {offsets = [0, 16], sizes = [2, 16], strides = [1, 1]} : vector<2x32xf32> to vector<2x16xf32>
    %224 = vector.extract_strided_slice %208 {offsets = [0, 32], sizes = [2, 16], strides = [1, 1]} : vector<2x48xf32> to vector<2x16xf32>
    %225 = vector.broadcast %8 : vector<1x16xf32> to vector<2x16xf32>
    %226 = arith.addf %224, %225 : vector<2x16xf32>
    %227 = vector.extract_strided_slice %209 {offsets = [0, 32], sizes = [2, 16], strides = [1, 1]} : vector<2x48xf32> to vector<2x16xf32>
    %228 = vector.broadcast %9 : vector<1x16xf32> to vector<2x16xf32>
    %229 = arith.addf %227, %228 : vector<2x16xf32>
    %230 = arith.mulf %222, %229 : vector<2x16xf32>
    %231 = arith.addf %226, %230 : vector<2x16xf32>
    %232 = math.tanh %231 : vector<2x16xf32>
    %cst_52 = arith.constant 1.000000e+00 : f32
    %233 = vector.broadcast %cst_52 : f32 to vector<2x16xf32>
    %234 = arith.subf %233, %223 : vector<2x16xf32>
    %235 = arith.mulf %234, %232 : vector<2x16xf32>
    %236 = arith.mulf %223, %146 : vector<2x16xf32>
    %237 = arith.addf %235, %236 : vector<2x16xf32>
    %cst_53 = arith.constant dense<0.000000e+00> : vector<2x48xf32>
    %238 = tpu.matmul %237, %2, %cst_53 {dimension_numbers = #tpu.dot_dimension_numbers<[1], [0], [0], [1], [0, 0, 1, 1], [], []>} : vector<2x16xf32>, vector<16x48xf32>, vector<2x48xf32> -> vector<2x48xf32>
    %cst_54 = arith.constant dense<0.000000e+00> : vector<2x48xf32>
    %239 = tpu.matmul %176, %3, %cst_54 {dimension_numbers = #tpu.dot_dimension_numbers<[1], [0], [0], [1], [0, 0, 1, 1], [], []>} : vector<2x16xf32>, vector<16x48xf32>, vector<2x48xf32> -> vector<2x48xf32>
    %240 = vector.extract_strided_slice %238 {offsets = [0, 0], sizes = [2, 32], strides = [1, 1]} : vector<2x48xf32> to vector<2x32xf32>
    %241 = vector.extract_strided_slice %239 {offsets = [0, 0], sizes = [2, 32], strides = [1, 1]} : vector<2x48xf32> to vector<2x32xf32>
    %242 = arith.addf %240, %241 : vector<2x32xf32>
    %243 = vector.broadcast %10 : vector<1x32xf32> to vector<2x32xf32>
    %244 = arith.addf %242, %243 : vector<2x32xf32>
    %cst_55 = arith.constant 5.000000e-01 : f32
    %245 = vector.broadcast %cst_55 : f32 to vector<2x32xf32>
    %246 = arith.mulf %245, %244 : vector<2x32xf32>
    %247 = math.tanh %246 : vector<2x32xf32>
    %cst_56 = arith.constant 1.000000e+00 : f32
    %248 = vector.broadcast %cst_56 : f32 to vector<2x32xf32>
    %249 = arith.addf %247, %248 : vector<2x32xf32>
    %cst_57 = arith.constant 5.000000e-01 : f32
    %250 = vector.broadcast %cst_57 : f32 to vector<2x32xf32>
    %251 = arith.mulf %250, %249 : vector<2x32xf32>
    %252 = vector.extract_strided_slice %251 {offsets = [0, 0], sizes = [2, 16], strides = [1, 1]} : vector<2x32xf32> to vector<2x16xf32>
    %253 = vector.extract_strided_slice %251 {offsets = [0, 16], sizes = [2, 16], strides = [1, 1]} : vector<2x32xf32> to vector<2x16xf32>
    %254 = vector.extract_strided_slice %238 {offsets = [0, 32], sizes = [2, 16], strides = [1, 1]} : vector<2x48xf32> to vector<2x16xf32>
    %255 = vector.broadcast %11 : vector<1x16xf32> to vector<2x16xf32>
    %256 = arith.addf %254, %255 : vector<2x16xf32>
    %257 = vector.extract_strided_slice %239 {offsets = [0, 32], sizes = [2, 16], strides = [1, 1]} : vector<2x48xf32> to vector<2x16xf32>
    %258 = vector.broadcast %12 : vector<1x16xf32> to vector<2x16xf32>
    %259 = arith.addf %257, %258 : vector<2x16xf32>
    %260 = arith.mulf %252, %259 : vector<2x16xf32>
    %261 = arith.addf %256, %260 : vector<2x16xf32>
    %262 = math.tanh %261 : vector<2x16xf32>
    %cst_58 = arith.constant 1.000000e+00 : f32
    %263 = vector.broadcast %cst_58 : f32 to vector<2x16xf32>
    %264 = arith.subf %263, %253 : vector<2x16xf32>
    %265 = arith.mulf %264, %262 : vector<2x16xf32>
    %266 = arith.mulf %253, %176 : vector<2x16xf32>
    %267 = arith.addf %265, %266 : vector<2x16xf32>
    %cst_59 = arith.constant dense<0.000000e+00> : vector<2x48xf32>
    %268 = tpu.matmul %267, %4, %cst_59 {dimension_numbers = #tpu.dot_dimension_numbers<[1], [0], [0], [1], [0, 0, 1, 1], [], []>} : vector<2x16xf32>, vector<16x48xf32>, vector<2x48xf32> -> vector<2x48xf32>
    %cst_60 = arith.constant dense<0.000000e+00> : vector<2x48xf32>
    %269 = tpu.matmul %206, %5, %cst_60 {dimension_numbers = #tpu.dot_dimension_numbers<[1], [0], [0], [1], [0, 0, 1, 1], [], []>} : vector<2x16xf32>, vector<16x48xf32>, vector<2x48xf32> -> vector<2x48xf32>
    %270 = vector.extract_strided_slice %268 {offsets = [0, 0], sizes = [2, 32], strides = [1, 1]} : vector<2x48xf32> to vector<2x32xf32>
    %271 = vector.extract_strided_slice %269 {offsets = [0, 0], sizes = [2, 32], strides = [1, 1]} : vector<2x48xf32> to vector<2x32xf32>
    %272 = arith.addf %270, %271 : vector<2x32xf32>
    %273 = vector.broadcast %13 : vector<1x32xf32> to vector<2x32xf32>
    %274 = arith.addf %272, %273 : vector<2x32xf32>
    %cst_61 = arith.constant 5.000000e-01 : f32
    %275 = vector.broadcast %cst_61 : f32 to vector<2x32xf32>
    %276 = arith.mulf %275, %274 : vector<2x32xf32>
    %277 = math.tanh %276 : vector<2x32xf32>
    %cst_62 = arith.constant 1.000000e+00 : f32
    %278 = vector.broadcast %cst_62 : f32 to vector<2x32xf32>
    %279 = arith.addf %277, %278 : vector<2x32xf32>
    %cst_63 = arith.constant 5.000000e-01 : f32
    %280 = vector.broadcast %cst_63 : f32 to vector<2x32xf32>
    %281 = arith.mulf %280, %279 : vector<2x32xf32>
    %282 = vector.extract_strided_slice %281 {offsets = [0, 0], sizes = [2, 16], strides = [1, 1]} : vector<2x32xf32> to vector<2x16xf32>
    %283 = vector.extract_strided_slice %281 {offsets = [0, 16], sizes = [2, 16], strides = [1, 1]} : vector<2x32xf32> to vector<2x16xf32>
    %284 = vector.extract_strided_slice %268 {offsets = [0, 32], sizes = [2, 16], strides = [1, 1]} : vector<2x48xf32> to vector<2x16xf32>
    %285 = vector.broadcast %14 : vector<1x16xf32> to vector<2x16xf32>
    %286 = arith.addf %284, %285 : vector<2x16xf32>
    %287 = vector.extract_strided_slice %269 {offsets = [0, 32], sizes = [2, 16], strides = [1, 1]} : vector<2x48xf32> to vector<2x16xf32>
    %288 = vector.broadcast %15 : vector<1x16xf32> to vector<2x16xf32>
    %289 = arith.addf %287, %288 : vector<2x16xf32>
    %290 = arith.mulf %282, %289 : vector<2x16xf32>
    %291 = arith.addf %286, %290 : vector<2x16xf32>
    %292 = math.tanh %291 : vector<2x16xf32>
    %cst_64 = arith.constant 1.000000e+00 : f32
    %293 = vector.broadcast %cst_64 : f32 to vector<2x16xf32>
    %294 = arith.subf %293, %283 : vector<2x16xf32>
    %295 = arith.mulf %294, %292 : vector<2x16xf32>
    %296 = arith.mulf %283, %206 : vector<2x16xf32>
    %297 = arith.addf %295, %296 : vector<2x16xf32>
    %298 = vector.extract_strided_slice %21 {offsets = [0, 3, 0], sizes = [2, 1, 48], strides = [1, 1, 1]} : vector<2x8x48xf32> to vector<2x1x48xf32>
    %299 = vector.shape_cast %298 : vector<2x1x48xf32> to vector<2x48xf32>
    %cst_65 = arith.constant dense<0.000000e+00> : vector<2x48xf32>
    %300 = tpu.matmul %237, %1, %cst_65 {dimension_numbers = #tpu.dot_dimension_numbers<[1], [0], [0], [1], [0, 0, 1, 1], [], []>} : vector<2x16xf32>, vector<16x48xf32>, vector<2x48xf32> -> vector<2x48xf32>
    %301 = vector.extract_strided_slice %299 {offsets = [0, 0], sizes = [2, 32], strides = [1, 1]} : vector<2x48xf32> to vector<2x32xf32>
    %302 = vector.extract_strided_slice %300 {offsets = [0, 0], sizes = [2, 32], strides = [1, 1]} : vector<2x48xf32> to vector<2x32xf32>
    %303 = arith.addf %301, %302 : vector<2x32xf32>
    %304 = vector.broadcast %7 : vector<1x32xf32> to vector<2x32xf32>
    %305 = arith.addf %303, %304 : vector<2x32xf32>
    %cst_66 = arith.constant 5.000000e-01 : f32
    %306 = vector.broadcast %cst_66 : f32 to vector<2x32xf32>
    %307 = arith.mulf %306, %305 : vector<2x32xf32>
    %308 = math.tanh %307 : vector<2x32xf32>
    %cst_67 = arith.constant 1.000000e+00 : f32
    %309 = vector.broadcast %cst_67 : f32 to vector<2x32xf32>
    %310 = arith.addf %308, %309 : vector<2x32xf32>
    %cst_68 = arith.constant 5.000000e-01 : f32
    %311 = vector.broadcast %cst_68 : f32 to vector<2x32xf32>
    %312 = arith.mulf %311, %310 : vector<2x32xf32>
    %313 = vector.extract_strided_slice %312 {offsets = [0, 0], sizes = [2, 16], strides = [1, 1]} : vector<2x32xf32> to vector<2x16xf32>
    %314 = vector.extract_strided_slice %312 {offsets = [0, 16], sizes = [2, 16], strides = [1, 1]} : vector<2x32xf32> to vector<2x16xf32>
    %315 = vector.extract_strided_slice %299 {offsets = [0, 32], sizes = [2, 16], strides = [1, 1]} : vector<2x48xf32> to vector<2x16xf32>
    %316 = vector.broadcast %8 : vector<1x16xf32> to vector<2x16xf32>
    %317 = arith.addf %315, %316 : vector<2x16xf32>
    %318 = vector.extract_strided_slice %300 {offsets = [0, 32], sizes = [2, 16], strides = [1, 1]} : vector<2x48xf32> to vector<2x16xf32>
    %319 = vector.broadcast %9 : vector<1x16xf32> to vector<2x16xf32>
    %320 = arith.addf %318, %319 : vector<2x16xf32>
    %321 = arith.mulf %313, %320 : vector<2x16xf32>
    %322 = arith.addf %317, %321 : vector<2x16xf32>
    %323 = math.tanh %322 : vector<2x16xf32>
    %cst_69 = arith.constant 1.000000e+00 : f32
    %324 = vector.broadcast %cst_69 : f32 to vector<2x16xf32>
    %325 = arith.subf %324, %314 : vector<2x16xf32>
    %326 = arith.mulf %325, %323 : vector<2x16xf32>
    %327 = arith.mulf %314, %237 : vector<2x16xf32>
    %328 = arith.addf %326, %327 : vector<2x16xf32>
    %cst_70 = arith.constant dense<0.000000e+00> : vector<2x48xf32>
    %329 = tpu.matmul %328, %2, %cst_70 {dimension_numbers = #tpu.dot_dimension_numbers<[1], [0], [0], [1], [0, 0, 1, 1], [], []>} : vector<2x16xf32>, vector<16x48xf32>, vector<2x48xf32> -> vector<2x48xf32>
    %cst_71 = arith.constant dense<0.000000e+00> : vector<2x48xf32>
    %330 = tpu.matmul %267, %3, %cst_71 {dimension_numbers = #tpu.dot_dimension_numbers<[1], [0], [0], [1], [0, 0, 1, 1], [], []>} : vector<2x16xf32>, vector<16x48xf32>, vector<2x48xf32> -> vector<2x48xf32>
    %331 = vector.extract_strided_slice %329 {offsets = [0, 0], sizes = [2, 32], strides = [1, 1]} : vector<2x48xf32> to vector<2x32xf32>
    %332 = vector.extract_strided_slice %330 {offsets = [0, 0], sizes = [2, 32], strides = [1, 1]} : vector<2x48xf32> to vector<2x32xf32>
    %333 = arith.addf %331, %332 : vector<2x32xf32>
    %334 = vector.broadcast %10 : vector<1x32xf32> to vector<2x32xf32>
    %335 = arith.addf %333, %334 : vector<2x32xf32>
    %cst_72 = arith.constant 5.000000e-01 : f32
    %336 = vector.broadcast %cst_72 : f32 to vector<2x32xf32>
    %337 = arith.mulf %336, %335 : vector<2x32xf32>
    %338 = math.tanh %337 : vector<2x32xf32>
    %cst_73 = arith.constant 1.000000e+00 : f32
    %339 = vector.broadcast %cst_73 : f32 to vector<2x32xf32>
    %340 = arith.addf %338, %339 : vector<2x32xf32>
    %cst_74 = arith.constant 5.000000e-01 : f32
    %341 = vector.broadcast %cst_74 : f32 to vector<2x32xf32>
    %342 = arith.mulf %341, %340 : vector<2x32xf32>
    %343 = vector.extract_strided_slice %342 {offsets = [0, 0], sizes = [2, 16], strides = [1, 1]} : vector<2x32xf32> to vector<2x16xf32>
    %344 = vector.extract_strided_slice %342 {offsets = [0, 16], sizes = [2, 16], strides = [1, 1]} : vector<2x32xf32> to vector<2x16xf32>
    %345 = vector.extract_strided_slice %329 {offsets = [0, 32], sizes = [2, 16], strides = [1, 1]} : vector<2x48xf32> to vector<2x16xf32>
    %346 = vector.broadcast %11 : vector<1x16xf32> to vector<2x16xf32>
    %347 = arith.addf %345, %346 : vector<2x16xf32>
    %348 = vector.extract_strided_slice %330 {offsets = [0, 32], sizes = [2, 16], strides = [1, 1]} : vector<2x48xf32> to vector<2x16xf32>
    %349 = vector.broadcast %12 : vector<1x16xf32> to vector<2x16xf32>
    %350 = arith.addf %348, %349 : vector<2x16xf32>
    %351 = arith.mulf %343, %350 : vector<2x16xf32>
    %352 = arith.addf %347, %351 : vector<2x16xf32>
    %353 = math.tanh %352 : vector<2x16xf32>
    %cst_75 = arith.constant 1.000000e+00 : f32
    %354 = vector.broadcast %cst_75 : f32 to vector<2x16xf32>
    %355 = arith.subf %354, %344 : vector<2x16xf32>
    %356 = arith.mulf %355, %353 : vector<2x16xf32>
    %357 = arith.mulf %344, %267 : vector<2x16xf32>
    %358 = arith.addf %356, %357 : vector<2x16xf32>
    %cst_76 = arith.constant dense<0.000000e+00> : vector<2x48xf32>
    %359 = tpu.matmul %358, %4, %cst_76 {dimension_numbers = #tpu.dot_dimension_numbers<[1], [0], [0], [1], [0, 0, 1, 1], [], []>} : vector<2x16xf32>, vector<16x48xf32>, vector<2x48xf32> -> vector<2x48xf32>
    %cst_77 = arith.constant dense<0.000000e+00> : vector<2x48xf32>
    %360 = tpu.matmul %297, %5, %cst_77 {dimension_numbers = #tpu.dot_dimension_numbers<[1], [0], [0], [1], [0, 0, 1, 1], [], []>} : vector<2x16xf32>, vector<16x48xf32>, vector<2x48xf32> -> vector<2x48xf32>
    %361 = vector.extract_strided_slice %359 {offsets = [0, 0], sizes = [2, 32], strides = [1, 1]} : vector<2x48xf32> to vector<2x32xf32>
    %362 = vector.extract_strided_slice %360 {offsets = [0, 0], sizes = [2, 32], strides = [1, 1]} : vector<2x48xf32> to vector<2x32xf32>
    %363 = arith.addf %361, %362 : vector<2x32xf32>
    %364 = vector.broadcast %13 : vector<1x32xf32> to vector<2x32xf32>
    %365 = arith.addf %363, %364 : vector<2x32xf32>
    %cst_78 = arith.constant 5.000000e-01 : f32
    %366 = vector.broadcast %cst_78 : f32 to vector<2x32xf32>
    %367 = arith.mulf %366, %365 : vector<2x32xf32>
    %368 = math.tanh %367 : vector<2x32xf32>
    %cst_79 = arith.constant 1.000000e+00 : f32
    %369 = vector.broadcast %cst_79 : f32 to vector<2x32xf32>
    %370 = arith.addf %368, %369 : vector<2x32xf32>
    %cst_80 = arith.constant 5.000000e-01 : f32
    %371 = vector.broadcast %cst_80 : f32 to vector<2x32xf32>
    %372 = arith.mulf %371, %370 : vector<2x32xf32>
    %373 = vector.extract_strided_slice %372 {offsets = [0, 0], sizes = [2, 16], strides = [1, 1]} : vector<2x32xf32> to vector<2x16xf32>
    %374 = vector.extract_strided_slice %372 {offsets = [0, 16], sizes = [2, 16], strides = [1, 1]} : vector<2x32xf32> to vector<2x16xf32>
    %375 = vector.extract_strided_slice %359 {offsets = [0, 32], sizes = [2, 16], strides = [1, 1]} : vector<2x48xf32> to vector<2x16xf32>
    %376 = vector.broadcast %14 : vector<1x16xf32> to vector<2x16xf32>
    %377 = arith.addf %375, %376 : vector<2x16xf32>
    %378 = vector.extract_strided_slice %360 {offsets = [0, 32], sizes = [2, 16], strides = [1, 1]} : vector<2x48xf32> to vector<2x16xf32>
    %379 = vector.broadcast %15 : vector<1x16xf32> to vector<2x16xf32>
    %380 = arith.addf %378, %379 : vector<2x16xf32>
    %381 = arith.mulf %373, %380 : vector<2x16xf32>
    %382 = arith.addf %377, %381 : vector<2x16xf32>
    %383 = math.tanh %382 : vector<2x16xf32>
    %cst_81 = arith.constant 1.000000e+00 : f32
    %384 = vector.broadcast %cst_81 : f32 to vector<2x16xf32>
    %385 = arith.subf %384, %374 : vector<2x16xf32>
    %386 = arith.mulf %385, %383 : vector<2x16xf32>
    %387 = arith.mulf %374, %297 : vector<2x16xf32>
    %388 = arith.addf %386, %387 : vector<2x16xf32>
    %389 = vector.extract_strided_slice %21 {offsets = [0, 4, 0], sizes = [2, 1, 48], strides = [1, 1, 1]} : vector<2x8x48xf32> to vector<2x1x48xf32>
    %390 = vector.shape_cast %389 : vector<2x1x48xf32> to vector<2x48xf32>
    %cst_82 = arith.constant dense<0.000000e+00> : vector<2x48xf32>
    %391 = tpu.matmul %328, %1, %cst_82 {dimension_numbers = #tpu.dot_dimension_numbers<[1], [0], [0], [1], [0, 0, 1, 1], [], []>} : vector<2x16xf32>, vector<16x48xf32>, vector<2x48xf32> -> vector<2x48xf32>
    %392 = vector.extract_strided_slice %390 {offsets = [0, 0], sizes = [2, 32], strides = [1, 1]} : vector<2x48xf32> to vector<2x32xf32>
    %393 = vector.extract_strided_slice %391 {offsets = [0, 0], sizes = [2, 32], strides = [1, 1]} : vector<2x48xf32> to vector<2x32xf32>
    %394 = arith.addf %392, %393 : vector<2x32xf32>
    %395 = vector.broadcast %7 : vector<1x32xf32> to vector<2x32xf32>
    %396 = arith.addf %394, %395 : vector<2x32xf32>
    %cst_83 = arith.constant 5.000000e-01 : f32
    %397 = vector.broadcast %cst_83 : f32 to vector<2x32xf32>
    %398 = arith.mulf %397, %396 : vector<2x32xf32>
    %399 = math.tanh %398 : vector<2x32xf32>
    %cst_84 = arith.constant 1.000000e+00 : f32
    %400 = vector.broadcast %cst_84 : f32 to vector<2x32xf32>
    %401 = arith.addf %399, %400 : vector<2x32xf32>
    %cst_85 = arith.constant 5.000000e-01 : f32
    %402 = vector.broadcast %cst_85 : f32 to vector<2x32xf32>
    %403 = arith.mulf %402, %401 : vector<2x32xf32>
    %404 = vector.extract_strided_slice %403 {offsets = [0, 0], sizes = [2, 16], strides = [1, 1]} : vector<2x32xf32> to vector<2x16xf32>
    %405 = vector.extract_strided_slice %403 {offsets = [0, 16], sizes = [2, 16], strides = [1, 1]} : vector<2x32xf32> to vector<2x16xf32>
    %406 = vector.extract_strided_slice %390 {offsets = [0, 32], sizes = [2, 16], strides = [1, 1]} : vector<2x48xf32> to vector<2x16xf32>
    %407 = vector.broadcast %8 : vector<1x16xf32> to vector<2x16xf32>
    %408 = arith.addf %406, %407 : vector<2x16xf32>
    %409 = vector.extract_strided_slice %391 {offsets = [0, 32], sizes = [2, 16], strides = [1, 1]} : vector<2x48xf32> to vector<2x16xf32>
    %410 = vector.broadcast %9 : vector<1x16xf32> to vector<2x16xf32>
    %411 = arith.addf %409, %410 : vector<2x16xf32>
    %412 = arith.mulf %404, %411 : vector<2x16xf32>
    %413 = arith.addf %408, %412 : vector<2x16xf32>
    %414 = math.tanh %413 : vector<2x16xf32>
    %cst_86 = arith.constant 1.000000e+00 : f32
    %415 = vector.broadcast %cst_86 : f32 to vector<2x16xf32>
    %416 = arith.subf %415, %405 : vector<2x16xf32>
    %417 = arith.mulf %416, %414 : vector<2x16xf32>
    %418 = arith.mulf %405, %328 : vector<2x16xf32>
    %419 = arith.addf %417, %418 : vector<2x16xf32>
    %cst_87 = arith.constant dense<0.000000e+00> : vector<2x48xf32>
    %420 = tpu.matmul %419, %2, %cst_87 {dimension_numbers = #tpu.dot_dimension_numbers<[1], [0], [0], [1], [0, 0, 1, 1], [], []>} : vector<2x16xf32>, vector<16x48xf32>, vector<2x48xf32> -> vector<2x48xf32>
    %cst_88 = arith.constant dense<0.000000e+00> : vector<2x48xf32>
    %421 = tpu.matmul %358, %3, %cst_88 {dimension_numbers = #tpu.dot_dimension_numbers<[1], [0], [0], [1], [0, 0, 1, 1], [], []>} : vector<2x16xf32>, vector<16x48xf32>, vector<2x48xf32> -> vector<2x48xf32>
    %422 = vector.extract_strided_slice %420 {offsets = [0, 0], sizes = [2, 32], strides = [1, 1]} : vector<2x48xf32> to vector<2x32xf32>
    %423 = vector.extract_strided_slice %421 {offsets = [0, 0], sizes = [2, 32], strides = [1, 1]} : vector<2x48xf32> to vector<2x32xf32>
    %424 = arith.addf %422, %423 : vector<2x32xf32>
    %425 = vector.broadcast %10 : vector<1x32xf32> to vector<2x32xf32>
    %426 = arith.addf %424, %425 : vector<2x32xf32>
    %cst_89 = arith.constant 5.000000e-01 : f32
    %427 = vector.broadcast %cst_89 : f32 to vector<2x32xf32>
    %428 = arith.mulf %427, %426 : vector<2x32xf32>
    %429 = math.tanh %428 : vector<2x32xf32>
    %cst_90 = arith.constant 1.000000e+00 : f32
    %430 = vector.broadcast %cst_90 : f32 to vector<2x32xf32>
    %431 = arith.addf %429, %430 : vector<2x32xf32>
    %cst_91 = arith.constant 5.000000e-01 : f32
    %432 = vector.broadcast %cst_91 : f32 to vector<2x32xf32>
    %433 = arith.mulf %432, %431 : vector<2x32xf32>
    %434 = vector.extract_strided_slice %433 {offsets = [0, 0], sizes = [2, 16], strides = [1, 1]} : vector<2x32xf32> to vector<2x16xf32>
    %435 = vector.extract_strided_slice %433 {offsets = [0, 16], sizes = [2, 16], strides = [1, 1]} : vector<2x32xf32> to vector<2x16xf32>
    %436 = vector.extract_strided_slice %420 {offsets = [0, 32], sizes = [2, 16], strides = [1, 1]} : vector<2x48xf32> to vector<2x16xf32>
    %437 = vector.broadcast %11 : vector<1x16xf32> to vector<2x16xf32>
    %438 = arith.addf %436, %437 : vector<2x16xf32>
    %439 = vector.extract_strided_slice %421 {offsets = [0, 32], sizes = [2, 16], strides = [1, 1]} : vector<2x48xf32> to vector<2x16xf32>
    %440 = vector.broadcast %12 : vector<1x16xf32> to vector<2x16xf32>
    %441 = arith.addf %439, %440 : vector<2x16xf32>
    %442 = arith.mulf %434, %441 : vector<2x16xf32>
    %443 = arith.addf %438, %442 : vector<2x16xf32>
    %444 = math.tanh %443 : vector<2x16xf32>
    %cst_92 = arith.constant 1.000000e+00 : f32
    %445 = vector.broadcast %cst_92 : f32 to vector<2x16xf32>
    %446 = arith.subf %445, %435 : vector<2x16xf32>
    %447 = arith.mulf %446, %444 : vector<2x16xf32>
    %448 = arith.mulf %435, %358 : vector<2x16xf32>
    %449 = arith.addf %447, %448 : vector<2x16xf32>
    %cst_93 = arith.constant dense<0.000000e+00> : vector<2x48xf32>
    %450 = tpu.matmul %449, %4, %cst_93 {dimension_numbers = #tpu.dot_dimension_numbers<[1], [0], [0], [1], [0, 0, 1, 1], [], []>} : vector<2x16xf32>, vector<16x48xf32>, vector<2x48xf32> -> vector<2x48xf32>
    %cst_94 = arith.constant dense<0.000000e+00> : vector<2x48xf32>
    %451 = tpu.matmul %388, %5, %cst_94 {dimension_numbers = #tpu.dot_dimension_numbers<[1], [0], [0], [1], [0, 0, 1, 1], [], []>} : vector<2x16xf32>, vector<16x48xf32>, vector<2x48xf32> -> vector<2x48xf32>
    %452 = vector.extract_strided_slice %450 {offsets = [0, 0], sizes = [2, 32], strides = [1, 1]} : vector<2x48xf32> to vector<2x32xf32>
    %453 = vector.extract_strided_slice %451 {offsets = [0, 0], sizes = [2, 32], strides = [1, 1]} : vector<2x48xf32> to vector<2x32xf32>
    %454 = arith.addf %452, %453 : vector<2x32xf32>
    %455 = vector.broadcast %13 : vector<1x32xf32> to vector<2x32xf32>
    %456 = arith.addf %454, %455 : vector<2x32xf32>
    %cst_95 = arith.constant 5.000000e-01 : f32
    %457 = vector.broadcast %cst_95 : f32 to vector<2x32xf32>
    %458 = arith.mulf %457, %456 : vector<2x32xf32>
    %459 = math.tanh %458 : vector<2x32xf32>
    %cst_96 = arith.constant 1.000000e+00 : f32
    %460 = vector.broadcast %cst_96 : f32 to vector<2x32xf32>
    %461 = arith.addf %459, %460 : vector<2x32xf32>
    %cst_97 = arith.constant 5.000000e-01 : f32
    %462 = vector.broadcast %cst_97 : f32 to vector<2x32xf32>
    %463 = arith.mulf %462, %461 : vector<2x32xf32>
    %464 = vector.extract_strided_slice %463 {offsets = [0, 0], sizes = [2, 16], strides = [1, 1]} : vector<2x32xf32> to vector<2x16xf32>
    %465 = vector.extract_strided_slice %463 {offsets = [0, 16], sizes = [2, 16], strides = [1, 1]} : vector<2x32xf32> to vector<2x16xf32>
    %466 = vector.extract_strided_slice %450 {offsets = [0, 32], sizes = [2, 16], strides = [1, 1]} : vector<2x48xf32> to vector<2x16xf32>
    %467 = vector.broadcast %14 : vector<1x16xf32> to vector<2x16xf32>
    %468 = arith.addf %466, %467 : vector<2x16xf32>
    %469 = vector.extract_strided_slice %451 {offsets = [0, 32], sizes = [2, 16], strides = [1, 1]} : vector<2x48xf32> to vector<2x16xf32>
    %470 = vector.broadcast %15 : vector<1x16xf32> to vector<2x16xf32>
    %471 = arith.addf %469, %470 : vector<2x16xf32>
    %472 = arith.mulf %464, %471 : vector<2x16xf32>
    %473 = arith.addf %468, %472 : vector<2x16xf32>
    %474 = math.tanh %473 : vector<2x16xf32>
    %cst_98 = arith.constant 1.000000e+00 : f32
    %475 = vector.broadcast %cst_98 : f32 to vector<2x16xf32>
    %476 = arith.subf %475, %465 : vector<2x16xf32>
    %477 = arith.mulf %476, %474 : vector<2x16xf32>
    %478 = arith.mulf %465, %388 : vector<2x16xf32>
    %479 = arith.addf %477, %478 : vector<2x16xf32>
    %480 = vector.extract_strided_slice %21 {offsets = [0, 5, 0], sizes = [2, 1, 48], strides = [1, 1, 1]} : vector<2x8x48xf32> to vector<2x1x48xf32>
    %481 = vector.shape_cast %480 : vector<2x1x48xf32> to vector<2x48xf32>
    %cst_99 = arith.constant dense<0.000000e+00> : vector<2x48xf32>
    %482 = tpu.matmul %419, %1, %cst_99 {dimension_numbers = #tpu.dot_dimension_numbers<[1], [0], [0], [1], [0, 0, 1, 1], [], []>} : vector<2x16xf32>, vector<16x48xf32>, vector<2x48xf32> -> vector<2x48xf32>
    %483 = vector.extract_strided_slice %481 {offsets = [0, 0], sizes = [2, 32], strides = [1, 1]} : vector<2x48xf32> to vector<2x32xf32>
    %484 = vector.extract_strided_slice %482 {offsets = [0, 0], sizes = [2, 32], strides = [1, 1]} : vector<2x48xf32> to vector<2x32xf32>
    %485 = arith.addf %483, %484 : vector<2x32xf32>
    %486 = vector.broadcast %7 : vector<1x32xf32> to vector<2x32xf32>
    %487 = arith.addf %485, %486 : vector<2x32xf32>
    %cst_100 = arith.constant 5.000000e-01 : f32
    %488 = vector.broadcast %cst_100 : f32 to vector<2x32xf32>
    %489 = arith.mulf %488, %487 : vector<2x32xf32>
    %490 = math.tanh %489 : vector<2x32xf32>
    %cst_101 = arith.constant 1.000000e+00 : f32
    %491 = vector.broadcast %cst_101 : f32 to vector<2x32xf32>
    %492 = arith.addf %490, %491 : vector<2x32xf32>
    %cst_102 = arith.constant 5.000000e-01 : f32
    %493 = vector.broadcast %cst_102 : f32 to vector<2x32xf32>
    %494 = arith.mulf %493, %492 : vector<2x32xf32>
    %495 = vector.extract_strided_slice %494 {offsets = [0, 0], sizes = [2, 16], strides = [1, 1]} : vector<2x32xf32> to vector<2x16xf32>
    %496 = vector.extract_strided_slice %494 {offsets = [0, 16], sizes = [2, 16], strides = [1, 1]} : vector<2x32xf32> to vector<2x16xf32>
    %497 = vector.extract_strided_slice %481 {offsets = [0, 32], sizes = [2, 16], strides = [1, 1]} : vector<2x48xf32> to vector<2x16xf32>
    %498 = vector.broadcast %8 : vector<1x16xf32> to vector<2x16xf32>
    %499 = arith.addf %497, %498 : vector<2x16xf32>
    %500 = vector.extract_strided_slice %482 {offsets = [0, 32], sizes = [2, 16], strides = [1, 1]} : vector<2x48xf32> to vector<2x16xf32>
    %501 = vector.broadcast %9 : vector<1x16xf32> to vector<2x16xf32>
    %502 = arith.addf %500, %501 : vector<2x16xf32>
    %503 = arith.mulf %495, %502 : vector<2x16xf32>
    %504 = arith.addf %499, %503 : vector<2x16xf32>
    %505 = math.tanh %504 : vector<2x16xf32>
    %cst_103 = arith.constant 1.000000e+00 : f32
    %506 = vector.broadcast %cst_103 : f32 to vector<2x16xf32>
    %507 = arith.subf %506, %496 : vector<2x16xf32>
    %508 = arith.mulf %507, %505 : vector<2x16xf32>
    %509 = arith.mulf %496, %419 : vector<2x16xf32>
    %510 = arith.addf %508, %509 : vector<2x16xf32>
    %cst_104 = arith.constant dense<0.000000e+00> : vector<2x48xf32>
    %511 = tpu.matmul %510, %2, %cst_104 {dimension_numbers = #tpu.dot_dimension_numbers<[1], [0], [0], [1], [0, 0, 1, 1], [], []>} : vector<2x16xf32>, vector<16x48xf32>, vector<2x48xf32> -> vector<2x48xf32>
    %cst_105 = arith.constant dense<0.000000e+00> : vector<2x48xf32>
    %512 = tpu.matmul %449, %3, %cst_105 {dimension_numbers = #tpu.dot_dimension_numbers<[1], [0], [0], [1], [0, 0, 1, 1], [], []>} : vector<2x16xf32>, vector<16x48xf32>, vector<2x48xf32> -> vector<2x48xf32>
    %513 = vector.extract_strided_slice %511 {offsets = [0, 0], sizes = [2, 32], strides = [1, 1]} : vector<2x48xf32> to vector<2x32xf32>
    %514 = vector.extract_strided_slice %512 {offsets = [0, 0], sizes = [2, 32], strides = [1, 1]} : vector<2x48xf32> to vector<2x32xf32>
    %515 = arith.addf %513, %514 : vector<2x32xf32>
    %516 = vector.broadcast %10 : vector<1x32xf32> to vector<2x32xf32>
    %517 = arith.addf %515, %516 : vector<2x32xf32>
    %cst_106 = arith.constant 5.000000e-01 : f32
    %518 = vector.broadcast %cst_106 : f32 to vector<2x32xf32>
    %519 = arith.mulf %518, %517 : vector<2x32xf32>
    %520 = math.tanh %519 : vector<2x32xf32>
    %cst_107 = arith.constant 1.000000e+00 : f32
    %521 = vector.broadcast %cst_107 : f32 to vector<2x32xf32>
    %522 = arith.addf %520, %521 : vector<2x32xf32>
    %cst_108 = arith.constant 5.000000e-01 : f32
    %523 = vector.broadcast %cst_108 : f32 to vector<2x32xf32>
    %524 = arith.mulf %523, %522 : vector<2x32xf32>
    %525 = vector.extract_strided_slice %524 {offsets = [0, 0], sizes = [2, 16], strides = [1, 1]} : vector<2x32xf32> to vector<2x16xf32>
    %526 = vector.extract_strided_slice %524 {offsets = [0, 16], sizes = [2, 16], strides = [1, 1]} : vector<2x32xf32> to vector<2x16xf32>
    %527 = vector.extract_strided_slice %511 {offsets = [0, 32], sizes = [2, 16], strides = [1, 1]} : vector<2x48xf32> to vector<2x16xf32>
    %528 = vector.broadcast %11 : vector<1x16xf32> to vector<2x16xf32>
    %529 = arith.addf %527, %528 : vector<2x16xf32>
    %530 = vector.extract_strided_slice %512 {offsets = [0, 32], sizes = [2, 16], strides = [1, 1]} : vector<2x48xf32> to vector<2x16xf32>
    %531 = vector.broadcast %12 : vector<1x16xf32> to vector<2x16xf32>
    %532 = arith.addf %530, %531 : vector<2x16xf32>
    %533 = arith.mulf %525, %532 : vector<2x16xf32>
    %534 = arith.addf %529, %533 : vector<2x16xf32>
    %535 = math.tanh %534 : vector<2x16xf32>
    %cst_109 = arith.constant 1.000000e+00 : f32
    %536 = vector.broadcast %cst_109 : f32 to vector<2x16xf32>
    %537 = arith.subf %536, %526 : vector<2x16xf32>
    %538 = arith.mulf %537, %535 : vector<2x16xf32>
    %539 = arith.mulf %526, %449 : vector<2x16xf32>
    %540 = arith.addf %538, %539 : vector<2x16xf32>
    %cst_110 = arith.constant dense<0.000000e+00> : vector<2x48xf32>
    %541 = tpu.matmul %540, %4, %cst_110 {dimension_numbers = #tpu.dot_dimension_numbers<[1], [0], [0], [1], [0, 0, 1, 1], [], []>} : vector<2x16xf32>, vector<16x48xf32>, vector<2x48xf32> -> vector<2x48xf32>
    %cst_111 = arith.constant dense<0.000000e+00> : vector<2x48xf32>
    %542 = tpu.matmul %479, %5, %cst_111 {dimension_numbers = #tpu.dot_dimension_numbers<[1], [0], [0], [1], [0, 0, 1, 1], [], []>} : vector<2x16xf32>, vector<16x48xf32>, vector<2x48xf32> -> vector<2x48xf32>
    %543 = vector.extract_strided_slice %541 {offsets = [0, 0], sizes = [2, 32], strides = [1, 1]} : vector<2x48xf32> to vector<2x32xf32>
    %544 = vector.extract_strided_slice %542 {offsets = [0, 0], sizes = [2, 32], strides = [1, 1]} : vector<2x48xf32> to vector<2x32xf32>
    %545 = arith.addf %543, %544 : vector<2x32xf32>
    %546 = vector.broadcast %13 : vector<1x32xf32> to vector<2x32xf32>
    %547 = arith.addf %545, %546 : vector<2x32xf32>
    %cst_112 = arith.constant 5.000000e-01 : f32
    %548 = vector.broadcast %cst_112 : f32 to vector<2x32xf32>
    %549 = arith.mulf %548, %547 : vector<2x32xf32>
    %550 = math.tanh %549 : vector<2x32xf32>
    %cst_113 = arith.constant 1.000000e+00 : f32
    %551 = vector.broadcast %cst_113 : f32 to vector<2x32xf32>
    %552 = arith.addf %550, %551 : vector<2x32xf32>
    %cst_114 = arith.constant 5.000000e-01 : f32
    %553 = vector.broadcast %cst_114 : f32 to vector<2x32xf32>
    %554 = arith.mulf %553, %552 : vector<2x32xf32>
    %555 = vector.extract_strided_slice %554 {offsets = [0, 0], sizes = [2, 16], strides = [1, 1]} : vector<2x32xf32> to vector<2x16xf32>
    %556 = vector.extract_strided_slice %554 {offsets = [0, 16], sizes = [2, 16], strides = [1, 1]} : vector<2x32xf32> to vector<2x16xf32>
    %557 = vector.extract_strided_slice %541 {offsets = [0, 32], sizes = [2, 16], strides = [1, 1]} : vector<2x48xf32> to vector<2x16xf32>
    %558 = vector.broadcast %14 : vector<1x16xf32> to vector<2x16xf32>
    %559 = arith.addf %557, %558 : vector<2x16xf32>
    %560 = vector.extract_strided_slice %542 {offsets = [0, 32], sizes = [2, 16], strides = [1, 1]} : vector<2x48xf32> to vector<2x16xf32>
    %561 = vector.broadcast %15 : vector<1x16xf32> to vector<2x16xf32>
    %562 = arith.addf %560, %561 : vector<2x16xf32>
    %563 = arith.mulf %555, %562 : vector<2x16xf32>
    %564 = arith.addf %559, %563 : vector<2x16xf32>
    %565 = math.tanh %564 : vector<2x16xf32>
    %cst_115 = arith.constant 1.000000e+00 : f32
    %566 = vector.broadcast %cst_115 : f32 to vector<2x16xf32>
    %567 = arith.subf %566, %556 : vector<2x16xf32>
    %568 = arith.mulf %567, %565 : vector<2x16xf32>
    %569 = arith.mulf %556, %479 : vector<2x16xf32>
    %570 = arith.addf %568, %569 : vector<2x16xf32>
    %571 = vector.extract_strided_slice %21 {offsets = [0, 6, 0], sizes = [2, 1, 48], strides = [1, 1, 1]} : vector<2x8x48xf32> to vector<2x1x48xf32>
    %572 = vector.shape_cast %571 : vector<2x1x48xf32> to vector<2x48xf32>
    %cst_116 = arith.constant dense<0.000000e+00> : vector<2x48xf32>
    %573 = tpu.matmul %510, %1, %cst_116 {dimension_numbers = #tpu.dot_dimension_numbers<[1], [0], [0], [1], [0, 0, 1, 1], [], []>} : vector<2x16xf32>, vector<16x48xf32>, vector<2x48xf32> -> vector<2x48xf32>
    %574 = vector.extract_strided_slice %572 {offsets = [0, 0], sizes = [2, 32], strides = [1, 1]} : vector<2x48xf32> to vector<2x32xf32>
    %575 = vector.extract_strided_slice %573 {offsets = [0, 0], sizes = [2, 32], strides = [1, 1]} : vector<2x48xf32> to vector<2x32xf32>
    %576 = arith.addf %574, %575 : vector<2x32xf32>
    %577 = vector.broadcast %7 : vector<1x32xf32> to vector<2x32xf32>
    %578 = arith.addf %576, %577 : vector<2x32xf32>
    %cst_117 = arith.constant 5.000000e-01 : f32
    %579 = vector.broadcast %cst_117 : f32 to vector<2x32xf32>
    %580 = arith.mulf %579, %578 : vector<2x32xf32>
    %581 = math.tanh %580 : vector<2x32xf32>
    %cst_118 = arith.constant 1.000000e+00 : f32
    %582 = vector.broadcast %cst_118 : f32 to vector<2x32xf32>
    %583 = arith.addf %581, %582 : vector<2x32xf32>
    %cst_119 = arith.constant 5.000000e-01 : f32
    %584 = vector.broadcast %cst_119 : f32 to vector<2x32xf32>
    %585 = arith.mulf %584, %583 : vector<2x32xf32>
    %586 = vector.extract_strided_slice %585 {offsets = [0, 0], sizes = [2, 16], strides = [1, 1]} : vector<2x32xf32> to vector<2x16xf32>
    %587 = vector.extract_strided_slice %585 {offsets = [0, 16], sizes = [2, 16], strides = [1, 1]} : vector<2x32xf32> to vector<2x16xf32>
    %588 = vector.extract_strided_slice %572 {offsets = [0, 32], sizes = [2, 16], strides = [1, 1]} : vector<2x48xf32> to vector<2x16xf32>
    %589 = vector.broadcast %8 : vector<1x16xf32> to vector<2x16xf32>
    %590 = arith.addf %588, %589 : vector<2x16xf32>
    %591 = vector.extract_strided_slice %573 {offsets = [0, 32], sizes = [2, 16], strides = [1, 1]} : vector<2x48xf32> to vector<2x16xf32>
    %592 = vector.broadcast %9 : vector<1x16xf32> to vector<2x16xf32>
    %593 = arith.addf %591, %592 : vector<2x16xf32>
    %594 = arith.mulf %586, %593 : vector<2x16xf32>
    %595 = arith.addf %590, %594 : vector<2x16xf32>
    %596 = math.tanh %595 : vector<2x16xf32>
    %cst_120 = arith.constant 1.000000e+00 : f32
    %597 = vector.broadcast %cst_120 : f32 to vector<2x16xf32>
    %598 = arith.subf %597, %587 : vector<2x16xf32>
    %599 = arith.mulf %598, %596 : vector<2x16xf32>
    %600 = arith.mulf %587, %510 : vector<2x16xf32>
    %601 = arith.addf %599, %600 : vector<2x16xf32>
    %cst_121 = arith.constant dense<0.000000e+00> : vector<2x48xf32>
    %602 = tpu.matmul %601, %2, %cst_121 {dimension_numbers = #tpu.dot_dimension_numbers<[1], [0], [0], [1], [0, 0, 1, 1], [], []>} : vector<2x16xf32>, vector<16x48xf32>, vector<2x48xf32> -> vector<2x48xf32>
    %cst_122 = arith.constant dense<0.000000e+00> : vector<2x48xf32>
    %603 = tpu.matmul %540, %3, %cst_122 {dimension_numbers = #tpu.dot_dimension_numbers<[1], [0], [0], [1], [0, 0, 1, 1], [], []>} : vector<2x16xf32>, vector<16x48xf32>, vector<2x48xf32> -> vector<2x48xf32>
    %604 = vector.extract_strided_slice %602 {offsets = [0, 0], sizes = [2, 32], strides = [1, 1]} : vector<2x48xf32> to vector<2x32xf32>
    %605 = vector.extract_strided_slice %603 {offsets = [0, 0], sizes = [2, 32], strides = [1, 1]} : vector<2x48xf32> to vector<2x32xf32>
    %606 = arith.addf %604, %605 : vector<2x32xf32>
    %607 = vector.broadcast %10 : vector<1x32xf32> to vector<2x32xf32>
    %608 = arith.addf %606, %607 : vector<2x32xf32>
    %cst_123 = arith.constant 5.000000e-01 : f32
    %609 = vector.broadcast %cst_123 : f32 to vector<2x32xf32>
    %610 = arith.mulf %609, %608 : vector<2x32xf32>
    %611 = math.tanh %610 : vector<2x32xf32>
    %cst_124 = arith.constant 1.000000e+00 : f32
    %612 = vector.broadcast %cst_124 : f32 to vector<2x32xf32>
    %613 = arith.addf %611, %612 : vector<2x32xf32>
    %cst_125 = arith.constant 5.000000e-01 : f32
    %614 = vector.broadcast %cst_125 : f32 to vector<2x32xf32>
    %615 = arith.mulf %614, %613 : vector<2x32xf32>
    %616 = vector.extract_strided_slice %615 {offsets = [0, 0], sizes = [2, 16], strides = [1, 1]} : vector<2x32xf32> to vector<2x16xf32>
    %617 = vector.extract_strided_slice %615 {offsets = [0, 16], sizes = [2, 16], strides = [1, 1]} : vector<2x32xf32> to vector<2x16xf32>
    %618 = vector.extract_strided_slice %602 {offsets = [0, 32], sizes = [2, 16], strides = [1, 1]} : vector<2x48xf32> to vector<2x16xf32>
    %619 = vector.broadcast %11 : vector<1x16xf32> to vector<2x16xf32>
    %620 = arith.addf %618, %619 : vector<2x16xf32>
    %621 = vector.extract_strided_slice %603 {offsets = [0, 32], sizes = [2, 16], strides = [1, 1]} : vector<2x48xf32> to vector<2x16xf32>
    %622 = vector.broadcast %12 : vector<1x16xf32> to vector<2x16xf32>
    %623 = arith.addf %621, %622 : vector<2x16xf32>
    %624 = arith.mulf %616, %623 : vector<2x16xf32>
    %625 = arith.addf %620, %624 : vector<2x16xf32>
    %626 = math.tanh %625 : vector<2x16xf32>
    %cst_126 = arith.constant 1.000000e+00 : f32
    %627 = vector.broadcast %cst_126 : f32 to vector<2x16xf32>
    %628 = arith.subf %627, %617 : vector<2x16xf32>
    %629 = arith.mulf %628, %626 : vector<2x16xf32>
    %630 = arith.mulf %617, %540 : vector<2x16xf32>
    %631 = arith.addf %629, %630 : vector<2x16xf32>
    %cst_127 = arith.constant dense<0.000000e+00> : vector<2x48xf32>
    %632 = tpu.matmul %631, %4, %cst_127 {dimension_numbers = #tpu.dot_dimension_numbers<[1], [0], [0], [1], [0, 0, 1, 1], [], []>} : vector<2x16xf32>, vector<16x48xf32>, vector<2x48xf32> -> vector<2x48xf32>
    %cst_128 = arith.constant dense<0.000000e+00> : vector<2x48xf32>
    %633 = tpu.matmul %570, %5, %cst_128 {dimension_numbers = #tpu.dot_dimension_numbers<[1], [0], [0], [1], [0, 0, 1, 1], [], []>} : vector<2x16xf32>, vector<16x48xf32>, vector<2x48xf32> -> vector<2x48xf32>
    %634 = vector.extract_strided_slice %632 {offsets = [0, 0], sizes = [2, 32], strides = [1, 1]} : vector<2x48xf32> to vector<2x32xf32>
    %635 = vector.extract_strided_slice %633 {offsets = [0, 0], sizes = [2, 32], strides = [1, 1]} : vector<2x48xf32> to vector<2x32xf32>
    %636 = arith.addf %634, %635 : vector<2x32xf32>
    %637 = vector.broadcast %13 : vector<1x32xf32> to vector<2x32xf32>
    %638 = arith.addf %636, %637 : vector<2x32xf32>
    %cst_129 = arith.constant 5.000000e-01 : f32
    %639 = vector.broadcast %cst_129 : f32 to vector<2x32xf32>
    %640 = arith.mulf %639, %638 : vector<2x32xf32>
    %641 = math.tanh %640 : vector<2x32xf32>
    %cst_130 = arith.constant 1.000000e+00 : f32
    %642 = vector.broadcast %cst_130 : f32 to vector<2x32xf32>
    %643 = arith.addf %641, %642 : vector<2x32xf32>
    %cst_131 = arith.constant 5.000000e-01 : f32
    %644 = vector.broadcast %cst_131 : f32 to vector<2x32xf32>
    %645 = arith.mulf %644, %643 : vector<2x32xf32>
    %646 = vector.extract_strided_slice %645 {offsets = [0, 0], sizes = [2, 16], strides = [1, 1]} : vector<2x32xf32> to vector<2x16xf32>
    %647 = vector.extract_strided_slice %645 {offsets = [0, 16], sizes = [2, 16], strides = [1, 1]} : vector<2x32xf32> to vector<2x16xf32>
    %648 = vector.extract_strided_slice %632 {offsets = [0, 32], sizes = [2, 16], strides = [1, 1]} : vector<2x48xf32> to vector<2x16xf32>
    %649 = vector.broadcast %14 : vector<1x16xf32> to vector<2x16xf32>
    %650 = arith.addf %648, %649 : vector<2x16xf32>
    %651 = vector.extract_strided_slice %633 {offsets = [0, 32], sizes = [2, 16], strides = [1, 1]} : vector<2x48xf32> to vector<2x16xf32>
    %652 = vector.broadcast %15 : vector<1x16xf32> to vector<2x16xf32>
    %653 = arith.addf %651, %652 : vector<2x16xf32>
    %654 = arith.mulf %646, %653 : vector<2x16xf32>
    %655 = arith.addf %650, %654 : vector<2x16xf32>
    %656 = math.tanh %655 : vector<2x16xf32>
    %cst_132 = arith.constant 1.000000e+00 : f32
    %657 = vector.broadcast %cst_132 : f32 to vector<2x16xf32>
    %658 = arith.subf %657, %647 : vector<2x16xf32>
    %659 = arith.mulf %658, %656 : vector<2x16xf32>
    %660 = arith.mulf %647, %570 : vector<2x16xf32>
    %661 = arith.addf %659, %660 : vector<2x16xf32>
    %662 = vector.extract_strided_slice %21 {offsets = [0, 7, 0], sizes = [2, 1, 48], strides = [1, 1, 1]} : vector<2x8x48xf32> to vector<2x1x48xf32>
    %663 = vector.shape_cast %662 : vector<2x1x48xf32> to vector<2x48xf32>
    %cst_133 = arith.constant dense<0.000000e+00> : vector<2x48xf32>
    %664 = tpu.matmul %601, %1, %cst_133 {dimension_numbers = #tpu.dot_dimension_numbers<[1], [0], [0], [1], [0, 0, 1, 1], [], []>} : vector<2x16xf32>, vector<16x48xf32>, vector<2x48xf32> -> vector<2x48xf32>
    %665 = vector.extract_strided_slice %663 {offsets = [0, 0], sizes = [2, 32], strides = [1, 1]} : vector<2x48xf32> to vector<2x32xf32>
    %666 = vector.extract_strided_slice %664 {offsets = [0, 0], sizes = [2, 32], strides = [1, 1]} : vector<2x48xf32> to vector<2x32xf32>
    %667 = arith.addf %665, %666 : vector<2x32xf32>
    %668 = vector.broadcast %7 : vector<1x32xf32> to vector<2x32xf32>
    %669 = arith.addf %667, %668 : vector<2x32xf32>
    %cst_134 = arith.constant 5.000000e-01 : f32
    %670 = vector.broadcast %cst_134 : f32 to vector<2x32xf32>
    %671 = arith.mulf %670, %669 : vector<2x32xf32>
    %672 = math.tanh %671 : vector<2x32xf32>
    %cst_135 = arith.constant 1.000000e+00 : f32
    %673 = vector.broadcast %cst_135 : f32 to vector<2x32xf32>
    %674 = arith.addf %672, %673 : vector<2x32xf32>
    %cst_136 = arith.constant 5.000000e-01 : f32
    %675 = vector.broadcast %cst_136 : f32 to vector<2x32xf32>
    %676 = arith.mulf %675, %674 : vector<2x32xf32>
    %677 = vector.extract_strided_slice %676 {offsets = [0, 0], sizes = [2, 16], strides = [1, 1]} : vector<2x32xf32> to vector<2x16xf32>
    %678 = vector.extract_strided_slice %676 {offsets = [0, 16], sizes = [2, 16], strides = [1, 1]} : vector<2x32xf32> to vector<2x16xf32>
    %679 = vector.extract_strided_slice %663 {offsets = [0, 32], sizes = [2, 16], strides = [1, 1]} : vector<2x48xf32> to vector<2x16xf32>
    %680 = vector.broadcast %8 : vector<1x16xf32> to vector<2x16xf32>
    %681 = arith.addf %679, %680 : vector<2x16xf32>
    %682 = vector.extract_strided_slice %664 {offsets = [0, 32], sizes = [2, 16], strides = [1, 1]} : vector<2x48xf32> to vector<2x16xf32>
    %683 = vector.broadcast %9 : vector<1x16xf32> to vector<2x16xf32>
    %684 = arith.addf %682, %683 : vector<2x16xf32>
    %685 = arith.mulf %677, %684 : vector<2x16xf32>
    %686 = arith.addf %681, %685 : vector<2x16xf32>
    %687 = math.tanh %686 : vector<2x16xf32>
    %cst_137 = arith.constant 1.000000e+00 : f32
    %688 = vector.broadcast %cst_137 : f32 to vector<2x16xf32>
    %689 = arith.subf %688, %678 : vector<2x16xf32>
    %690 = arith.mulf %689, %687 : vector<2x16xf32>
    %691 = arith.mulf %678, %601 : vector<2x16xf32>
    %692 = arith.addf %690, %691 : vector<2x16xf32>
    %cst_138 = arith.constant dense<0.000000e+00> : vector<2x48xf32>
    %693 = tpu.matmul %692, %2, %cst_138 {dimension_numbers = #tpu.dot_dimension_numbers<[1], [0], [0], [1], [0, 0, 1, 1], [], []>} : vector<2x16xf32>, vector<16x48xf32>, vector<2x48xf32> -> vector<2x48xf32>
    %cst_139 = arith.constant dense<0.000000e+00> : vector<2x48xf32>
    %694 = tpu.matmul %631, %3, %cst_139 {dimension_numbers = #tpu.dot_dimension_numbers<[1], [0], [0], [1], [0, 0, 1, 1], [], []>} : vector<2x16xf32>, vector<16x48xf32>, vector<2x48xf32> -> vector<2x48xf32>
    %695 = vector.extract_strided_slice %693 {offsets = [0, 0], sizes = [2, 32], strides = [1, 1]} : vector<2x48xf32> to vector<2x32xf32>
    %696 = vector.extract_strided_slice %694 {offsets = [0, 0], sizes = [2, 32], strides = [1, 1]} : vector<2x48xf32> to vector<2x32xf32>
    %697 = arith.addf %695, %696 : vector<2x32xf32>
    %698 = vector.broadcast %10 : vector<1x32xf32> to vector<2x32xf32>
    %699 = arith.addf %697, %698 : vector<2x32xf32>
    %cst_140 = arith.constant 5.000000e-01 : f32
    %700 = vector.broadcast %cst_140 : f32 to vector<2x32xf32>
    %701 = arith.mulf %700, %699 : vector<2x32xf32>
    %702 = math.tanh %701 : vector<2x32xf32>
    %cst_141 = arith.constant 1.000000e+00 : f32
    %703 = vector.broadcast %cst_141 : f32 to vector<2x32xf32>
    %704 = arith.addf %702, %703 : vector<2x32xf32>
    %cst_142 = arith.constant 5.000000e-01 : f32
    %705 = vector.broadcast %cst_142 : f32 to vector<2x32xf32>
    %706 = arith.mulf %705, %704 : vector<2x32xf32>
    %707 = vector.extract_strided_slice %706 {offsets = [0, 0], sizes = [2, 16], strides = [1, 1]} : vector<2x32xf32> to vector<2x16xf32>
    %708 = vector.extract_strided_slice %706 {offsets = [0, 16], sizes = [2, 16], strides = [1, 1]} : vector<2x32xf32> to vector<2x16xf32>
    %709 = vector.extract_strided_slice %693 {offsets = [0, 32], sizes = [2, 16], strides = [1, 1]} : vector<2x48xf32> to vector<2x16xf32>
    %710 = vector.broadcast %11 : vector<1x16xf32> to vector<2x16xf32>
    %711 = arith.addf %709, %710 : vector<2x16xf32>
    %712 = vector.extract_strided_slice %694 {offsets = [0, 32], sizes = [2, 16], strides = [1, 1]} : vector<2x48xf32> to vector<2x16xf32>
    %713 = vector.broadcast %12 : vector<1x16xf32> to vector<2x16xf32>
    %714 = arith.addf %712, %713 : vector<2x16xf32>
    %715 = arith.mulf %707, %714 : vector<2x16xf32>
    %716 = arith.addf %711, %715 : vector<2x16xf32>
    %717 = math.tanh %716 : vector<2x16xf32>
    %cst_143 = arith.constant 1.000000e+00 : f32
    %718 = vector.broadcast %cst_143 : f32 to vector<2x16xf32>
    %719 = arith.subf %718, %708 : vector<2x16xf32>
    %720 = arith.mulf %719, %717 : vector<2x16xf32>
    %721 = arith.mulf %708, %631 : vector<2x16xf32>
    %722 = arith.addf %720, %721 : vector<2x16xf32>
    %cst_144 = arith.constant dense<0.000000e+00> : vector<2x48xf32>
    %723 = tpu.matmul %722, %4, %cst_144 {dimension_numbers = #tpu.dot_dimension_numbers<[1], [0], [0], [1], [0, 0, 1, 1], [], []>} : vector<2x16xf32>, vector<16x48xf32>, vector<2x48xf32> -> vector<2x48xf32>
    %cst_145 = arith.constant dense<0.000000e+00> : vector<2x48xf32>
    %724 = tpu.matmul %661, %5, %cst_145 {dimension_numbers = #tpu.dot_dimension_numbers<[1], [0], [0], [1], [0, 0, 1, 1], [], []>} : vector<2x16xf32>, vector<16x48xf32>, vector<2x48xf32> -> vector<2x48xf32>
    %725 = vector.extract_strided_slice %723 {offsets = [0, 0], sizes = [2, 32], strides = [1, 1]} : vector<2x48xf32> to vector<2x32xf32>
    %726 = vector.extract_strided_slice %724 {offsets = [0, 0], sizes = [2, 32], strides = [1, 1]} : vector<2x48xf32> to vector<2x32xf32>
    %727 = arith.addf %725, %726 : vector<2x32xf32>
    %728 = vector.broadcast %13 : vector<1x32xf32> to vector<2x32xf32>
    %729 = arith.addf %727, %728 : vector<2x32xf32>
    %cst_146 = arith.constant 5.000000e-01 : f32
    %730 = vector.broadcast %cst_146 : f32 to vector<2x32xf32>
    %731 = arith.mulf %730, %729 : vector<2x32xf32>
    %732 = math.tanh %731 : vector<2x32xf32>
    %cst_147 = arith.constant 1.000000e+00 : f32
    %733 = vector.broadcast %cst_147 : f32 to vector<2x32xf32>
    %734 = arith.addf %732, %733 : vector<2x32xf32>
    %cst_148 = arith.constant 5.000000e-01 : f32
    %735 = vector.broadcast %cst_148 : f32 to vector<2x32xf32>
    %736 = arith.mulf %735, %734 : vector<2x32xf32>
    %737 = vector.extract_strided_slice %736 {offsets = [0, 0], sizes = [2, 16], strides = [1, 1]} : vector<2x32xf32> to vector<2x16xf32>
    %738 = vector.extract_strided_slice %736 {offsets = [0, 16], sizes = [2, 16], strides = [1, 1]} : vector<2x32xf32> to vector<2x16xf32>
    %739 = vector.extract_strided_slice %723 {offsets = [0, 32], sizes = [2, 16], strides = [1, 1]} : vector<2x48xf32> to vector<2x16xf32>
    %740 = vector.broadcast %14 : vector<1x16xf32> to vector<2x16xf32>
    %741 = arith.addf %739, %740 : vector<2x16xf32>
    %742 = vector.extract_strided_slice %724 {offsets = [0, 32], sizes = [2, 16], strides = [1, 1]} : vector<2x48xf32> to vector<2x16xf32>
    %743 = vector.broadcast %15 : vector<1x16xf32> to vector<2x16xf32>
    %744 = arith.addf %742, %743 : vector<2x16xf32>
    %745 = arith.mulf %737, %744 : vector<2x16xf32>
    %746 = arith.addf %741, %745 : vector<2x16xf32>
    %747 = math.tanh %746 : vector<2x16xf32>
    %cst_149 = arith.constant 1.000000e+00 : f32
    %748 = vector.broadcast %cst_149 : f32 to vector<2x16xf32>
    %749 = arith.subf %748, %738 : vector<2x16xf32>
    %750 = arith.mulf %749, %747 : vector<2x16xf32>
    %751 = arith.mulf %738, %661 : vector<2x16xf32>
    %752 = arith.addf %750, %751 : vector<2x16xf32>
    %753 = vector.broadcast %16 : vector<1x16xf32> to vector<2x16xf32>
    %754 = arith.mulf %752, %753 : vector<2x16xf32>
    %cst_150 = arith.constant dense<0.000000e+00> : vector<2xf32>
    %755 = vector.multi_reduction <add>, %754, %cst_150 [1] : vector<2x16xf32> to vector<2xf32>
    %756 = vector.shape_cast %755 : vector<2xf32> to vector<2x1xf32>
    %757 = vector.broadcast %17 : vector<1x1xf32> to vector<2x1xf32>
    %758 = arith.addf %756, %757 : vector<2x1xf32>
    %c0_151 = arith.constant 0 : index
    %c0_152 = arith.constant 0 : index
    %759 = vector.load %arg3[%c0_151, %c0_152] : memref<2x1xf32, #tpu.memory_space<vmem>>, vector<2x1xf32>
    tpu.vector_store %arg3[%c0_151, %c0_152], %758 {strides = array<i32>} : memref<2x1xf32, #tpu.memory_space<vmem>>, vector<2x1xf32>,
    return
  }
}

</mosaic_0001>

<bundles_post_ra>
// kernel: gru_regressor_forward.1
= control target key start
LH: loop header
LB: loop body
LE: loop exit
PB: predicated region body
PF: predicated region fallthrough
CT: control target
= control target key end

     0   :  { %vm28_vm0 = vcmask 64512   ;;  %v2144_v6 = vmov 0.0   ;;  %s2145_s22 = smov 112   ;;  %s2146_s25 = smov 96   ;;  %vm147_vm1 = vcmask 1041409   ;;  %vm58_vm2 = vcmask 130048   ;;  %s2787_s1 = inlined_call_operand.vmem [shape: f32[88,48], index: 1, kind: input, shape index: {}]   ;;  %s2788_s0 = inlined_call_operand.vmem [shape: f32[2,8,8], index: 0, kind: input, shape index: {}]   ;;  %s2789_s2 = inlined_call_operand.vmem [shape: f32[4,64], index: 2, kind: input, shape index: {}]   ;;  %s2790_s3 = inlined_call_operand.vmem [shape: f32[2,1], index: 3, kind: output, shape index: {}]  }
   0x1   :  { %v14_v0 = vld [vmem:[%s2787_s1] sm:$0xff]  ;;  %v2175_v1 = vld [vmem:[%s2787_s1 + $0x10] sm:$0xff]  ;;  %v2184_v3 = vld [vmem:[%s2787_s1 + $0x8] sm:$0xff]  ;;  %s2148_s11 = smov 16   ;;  %vm1946_vm3 = vcmask 123904   ;;  %vm1955_vm4 = vcmask 1024  }
   0x2   :  { %v26_v2 = vld [vmem:[%s2788_s0] sm:$0xff]  ;;  %50 = vmatpush.msra.mxu0 %v14_v0  ;;  %76 = vmatpush.msra.mxu1 %v2175_v1  ;;  %v27_v7 = vld [vmem:[%s2788_s0 + $0x8] sm:$0xff]  ;;  %s2147_s0 = smov 32   ;;  %v2233_v39 = vld [vmem:[%s2787_s1 + $0x30] sm:$0xff] }
   0x3   :  { %v2189_v4 = vld [vmem:[%s2789_s2] sm:$0xf]  ;;  %1961 = vmatmul.msk.f32.vlgmr.msra.gmra.mxu0 %vm28_vm0, %v26_v2  ;;  %v2238_v40 = vld [vmem:[%s2787_s1 + $0x28] sm:$0xff]  ;;  %187 = vmatpush.msra.mxu3 %v2233_v39  ;;  %v2253_v43 = vld [vmem:[%s2787_s1 + $0x18] sm:$0xff] }
   0x4   :  { %v2193_v5 = vperm.slane %v2189_v4, 0  ;;  %77 = vmatpush.msra.mxu1 %v2184_v3  ;;  %v2241_v41 = vperm.slane %v2189_v4, 1  ;;  %v2246_v42 = vld [vmem:[%s2787_s1 + $0x20] sm:$0xff] }
   0x5   :  { %78 = vmatmul.f32.vlgmr.msra.gmra.mxu1 %v2144_v6  ;;  %167 = vmatpush.msra.mxu2 %v2246_v42 }
   0x6   :  { %102 = vrot.lane.b32.xlu0 %v2193_v5, %s2145_s22  ;;  %402 = vmatpush.msrb.mxu0 %v2246_v42 }
   0x7   :  { %188 = vmatpush.msra.mxu3 %v2238_v40  ;;  %168 = vmatpush.msra.mxu2 %v2253_v43 }
   0x8   :  { %189 = vmatmul.f32.vlgmr.msra.gmra.mxu3 %v2144_v6  ;;  %403 = vmatpush.msrb.mxu0 %v2253_v43 }
   0x9   :  { %316 = vmatpush.msrb.mxu3 %v2175_v1 }
   0xa   :  { %546 = vmatpush.msra.mxu0 %v2175_v1 }
   0xb   :  { %1962 = vmatmul.msk.f32.gmra.mxu0 %vm28_vm0, %v27_v7  ;;  %317 = vmatpush.msrb.mxu3 %v2184_v3 }
   0xc   :  { %547 = vmatpush.msra.mxu0 %v2184_v3 }
  0x78   :  { %v2203_v8 = vpop.permute.xlu0 %102 }
  0x80   :  { %v2208_v12 = vpop.f32.mrf.mxu0 }
  0x81   :  { %v2220_v31 = vadd.f32 %v2193_v5, %v2208_v12 }
  0x82   :  { %v79_v9 = vpop.f32.mrf.mxu1 }
  0x83   :  { %v105_v10 = vadd.f32 %v2203_v8, %v79_v9  ;;  %v83_v14 = vrot.slane %v79_v9, 1  ;;  %v86_v15 = vadd.f32 %v79_v9, %v2208_v12 }
  0x85   :  { %108 = vrot.lane.b32.xlu1 %v105_v10, %s2146_s25  ;;  %v107_v11 = vrot.slane %v105_v10, 1  ;;  %v89_v17 = vadd.f32 %v2193_v5, %v86_v15 }
  0x87   :  { %110 = vrot.lane.b32.xlu0 %v107_v11, %s2146_s25  ;;  %v91_v19 = vmul.f32 0.5, %v89_v17 }
  0x88   :  { %v2210_v13 = vpop.f32.mrf.mxu0 }
  0x89   :  { %v87_v16 = vadd.f32 %v83_v14, %v2210_v13  ;;  %2005 = vtanh.f32 %v91_v19  ;;  %v2226_v35 = vadd.f32 %v2193_v5, %v2210_v13 }
  0x8b   :  { %v90_v18 = vadd.f32 %v2193_v5, %v87_v16  ;;  %v190_v57 = vpop.f32.mrf.mxu3 }
  0x8d   :  { %v92_v20 = vmul.f32 0.5, %v90_v18 }
  0x8f   :  { %2007 = vtanh.f32 %v92_v20  ;;  %v2006_v21 = vpop.eup %2005 }
  0x90   :  { %v95_v23 = vadd.f32 1.0, %v2006_v21 }
  0x92   :  { %v97_v25 = vmul.f32 0.5, %v95_v23 }
  0x94   :  { %v128_v45 = vsub.f32 1.0, %v97_v25  ;;  %v140_v51 = vmul.f32 0.0, %v97_v25 }
  0x95   :  { %v2008_v22 = vpop.eup %2007 }
  0x96   :  { %v96_v24 = vadd.f32 1.0, %v2008_v22 }
  0x98   :  { %v98_v28 = vmul.f32 0.5, %v96_v24 }
  0x9a   :  { %v129_v46 = vsub.f32 1.0, %v98_v28  ;;  %v141_v49 = vmul.f32 0.0, %v98_v28 }
  0xf7   :  { %v109_v26 = vpop.permute.xlu1 %108 }
  0xf8   :  { %v114_v27 = vmul.f32 %v109_v26, %v97_v25 }
  0xf9   :  { %v111_v29 = vpop.permute.xlu0 %110 }
  0xfa   :  { %v115_v30 = vmul.f32 %v111_v29, %v98_v28  ;;  %118 = vrot.lane.b32.xlu2 %v114_v27, %s2147_s0 }
  0xfc   :  { %120 = vrot.lane.b32.xlu1 %v115_v30, %s2147_s0 }
 0x154   :  { %v119_v32 = vpop.permute.xlu2 %118 }
 0x155   :  { %v124_v33 = vadd.f32 %v119_v32, %v2220_v31 }
 0x157   :  { %2009 = vtanh.f32 %v124_v33 }
 0x15d   :  { %v2010_v34 = vpop.eup %2009 }
 0x15e   :  { %132 = vrot.lane.b32.xlu0 %v2010_v34, %s2145_s22 }
 0x16e   :  { %v121_v36 = vpop.permute.xlu1 %120 }
 0x16f   :  { %v125_v37 = vadd.f32 %v121_v36, %v2226_v35 }
 0x171   :  { %2011 = vtanh.f32 %v125_v37 }
 0x177   :  { %v2012_v38 = vpop.eup %2011 }
 0x178   :  { %134 = vrot.lane.b32.xlu2 %v2012_v38, %s2145_s22 }
 0x180   :  { %202 = vrot.lane.b32.xlu2 %v2241_v41, %s2145_s22 }
 0x1d0   :  { %v133_v44 = vpop.permute.xlu0 %132 }
 0x1d1   :  { %v138_v48 = vmul.f32 %v133_v44, %v128_v45 }
 0x1d2   :  { %v135_v47 = vpop.permute.xlu2 %134 }
 0x1d3   :  { %v139_v50 = vmul.f32 %v135_v47, %v129_v46  ;;  %v2268_v53 = vadd.f32 %v140_v51, %v138_v48 }
 0x1d5   :  { %v2266_v52 = vadd.f32 %v141_v49, %v139_v50 }
 0x1d7   :  { %v146_v54 = vrot.slane %v2266_v52, 7 }
 0x1d9   :  { %v148_v55 = vsel %vm147_vm1, %v146_v54, %v2268_v53 }
 0x1da   :  { %149 = vrot.lane.b32.xlu1 %v148_v55, %s2145_s22  ;;  %v2276_v56 = vpop.permute.xlu2 %202 }
 0x1db   :  { %v205_v58 = vadd.f32 %v2276_v56, %v190_v57 }
 0x1dd   :  { %207 = vrot.lane.b32.xlu0 %v205_v58, %s2146_s25 }
 0x24c   :  { %v150_v59 = vpop.permute.xlu1 %149 }
 0x24d   :  { %1963 = vmatmul.msk.f32.vlgmr.msra.gmra.mxu2 %vm58_vm2, %v150_v59  ;;  %1965 = vmatmul.msk.f32.vlgmr.msrb.gmra.mxu3 %vm58_vm2, %v150_v59  ;;  %v2309_v59 = vld [vmem:[%s2787_s1 + $0x50] sm:$0xff] }
 0x24e   :  { %264 = vmatpush.msrb.mxu2 %v2309_v59  ;;  %499 = vmatpush.msra.mxu3 %v2309_v59 }
 0x24f   :  { %v208_v11 = vpop.permute.xlu0 %207 }
 0x2d0   :  { %v170_v60 = vpop.f32.mrf.mxu2  ;;  %v319_v61 = vpop.f32.mrf.mxu3 }
 0x2d1   :  { %v193_v62 = vadd.f32 %v190_v57, %v170_v60  ;;  %v338_v63 = vadd.f32 %v319_v61, %v2203_v8  ;;  %v327_v16 = vadd.f32 %v319_v61, %v2210_v13  ;;  %v323_v21 = vrot.slane %v319_v61, 7  ;;  %v2319_v61 = vld [vmem:[%s2787_s1 + $0x40] sm:$0xff] }
 0x2d2   :  { %v200_v34 = vadd.f32 %v2241_v41, %v170_v60  ;;  %v2314_v60 = vld [vmem:[%s2787_s1 + $0x48] sm:$0xff]  ;;  %244 = vmatpush.msrb.mxu1 %v2319_v61 }
 0x2d3   :  { %v195_v0 = vadd.f32 %v2241_v41, %v193_v62  ;;  %343 = vrot.lane.b32.xlu2 %v338_v63, %s2146_s25  ;;  %v340_v2 = vrot.slane %v338_v63, 7  ;;  %v329_v17 = vadd.f32 %v327_v16, %v2193_v5  ;;  %v326_v23 = vadd.f32 %v323_v21, %v2208_v12  ;;  %v2326_v62 = vld [vmem:[%s2787_s1 + $0x38] sm:$0xff]  ;;  %265 = vmatpush.msrb.mxu2 %v2314_v60 }
 0x2d4   :  { %245 = vmatpush.msrb.mxu1 %v2326_v62  ;;  %266 = vmatmul.f32.vlgmr.msrb.gmra.mxu2 %v2144_v6  ;;  %v2342_v6 = vperm.slane %v2189_v4, 2 }
 0x2d5   :  { %v196_v7 = vmul.f32 0.5, %v195_v0  ;;  %341 = vrot.lane.b32.xlu1 %v340_v2, %s2146_s25  ;;  %v331_v18 = vmul.f32 0.5, %v329_v17  ;;  %v328_v26 = vadd.f32 %v326_v23, %v2193_v5  ;;  %500 = vmatpush.msra.mxu3 %v2314_v60  ;;  %v373_v0 = vrot.slane %v2268_v53, 7 }
 0x2d6   :  { %422 = vmatpush.msra.mxu1 %v2233_v39  ;;  %474 = vmatpush.msra.mxu2 %v2319_v61 }
 0x2d7   :  { %2013 = vtanh.f32 %v196_v7  ;;  %v330_v27 = vmul.f32 0.5, %v328_v26  ;;  %708 = vmatpush.msrb.mxu3 %v2319_v61 }
 0x2d8   :  { %2015 = vtanh.f32 %v331_v18  ;;  %423 = vmatpush.msra.mxu1 %v2238_v40  ;;  %475 = vmatpush.msra.mxu2 %v2326_v62 }
 0x2d9   :  { %2017 = vtanh.f32 %v330_v27  ;;  %709 = vmatpush.msrb.mxu3 %v2326_v62 }
 0x2da   :  { %656 = vmatpush.msrb.mxu2 %v2233_v39 }
 0x2dc   :  { %657 = vmatpush.msrb.mxu2 %v2238_v40 }
 0x2dd   :  { %v2014_v9 = vpop.eup %2013 }
 0x2de   :  { %v198_v10 = vadd.f32 1.0, %v2014_v9  ;;  %v2016_v19 = vpop.eup %2015 }
 0x2df   :  { %v335_v20 = vadd.f32 1.0, %v2016_v19  ;;  %v2018_v28 = vpop.eup %2017 }
 0x2e0   :  { %v199_v14 = vmul.f32 0.5, %v198_v10  ;;  %v334_v29 = vadd.f32 1.0, %v2018_v28 }
 0x2e1   :  { %v2289_v22 = vmul.f32 0.5, %v335_v20 }
 0x2e2   :  { %v210_v15 = vmul.f32 %v208_v11, %v199_v14  ;;  %v336_v30 = vmul.f32 0.5, %v334_v29  ;;  %v217_v50 = vsub.f32 1.0, %v199_v14  ;;  %v223_v55 = vmul.f32 0.0, %v199_v14 }
 0x2e3   :  { %v362_v2 = vsub.f32 1.0, %v2289_v22 }
 0x2e4   :  { %212 = vrot.lane.b32.xlu0 %v210_v15, %s2147_s0  ;;  %v361_v7 = vsub.f32 1.0, %v336_v30  ;;  %v376_v11 = vmul.f32 %v373_v0, %v336_v30  ;;  %v377_v15 = vmul.f32 %v2289_v22, %v146_v54 }
 0x32d   :  { %v344_v24 = vpop.permute.xlu2 %343 }
 0x32e   :  { %v348_v25 = vmul.f32 %v344_v24, %v2289_v22 }
 0x330   :  { %353 = vrot.lane.b32.xlu2 %v348_v25, %s2147_s0 }
 0x347   :  { %v342_v32 = vpop.permute.xlu1 %341 }
 0x348   :  { %v347_v33 = vmul.f32 %v342_v32, %v336_v30 }
 0x34a   :  { %351 = vrot.lane.b32.xlu1 %v347_v33, %s2147_s0 }
 0x356   :  { %v213_v36 = vpop.permute.xlu0 %212 }
 0x357   :  { %v215_v37 = vadd.f32 %v213_v36, %v200_v34  ;;  %v267_v22 = vpop.f32.mrf.mxu2 }
 0x359   :  { %2019 = vtanh.f32 %v215_v37 }
 0x35f   :  { %v2020_v38 = vpop.eup %2019 }
 0x360   :  { %219 = vrot.lane.b32.xlu0 %v2020_v38, %s2145_s22 }
 0x38a   :  { %v354_v44 = vpop.permute.xlu2 %353 }
 0x38b   :  { %v358_v45 = vadd.f32 %v354_v44, %v2226_v35 }
 0x38d   :  { %2021 = vtanh.f32 %v358_v45 }
 0x393   :  { %v2022_v46 = vpop.eup %2021 }
 0x394   :  { %367 = vrot.lane.b32.xlu2 %v2022_v46, %s2145_s22 }
 0x39c   :  { %279 = vrot.lane.b32.xlu2 %v2342_v6, %s2145_s22 }
 0x3bc   :  { %v352_v47 = vpop.permute.xlu1 %351 }
 0x3bd   :  { %v357_v48 = vadd.f32 %v352_v47, %v2220_v31 }
 0x3bf   :  { %2023 = vtanh.f32 %v357_v48 }
 0x3c5   :  { %v2024_v49 = vpop.eup %2023 }
 0x3c6   :  { %365 = vrot.lane.b32.xlu1 %v2024_v49, %s2145_s22 }
 0x3d2   :  { %v220_v51 = vpop.permute.xlu0 %219 }
 0x3d3   :  { %v222_v57 = vmul.f32 %v220_v51, %v217_v50 }
 0x3d5   :  { %v2302_v58 = vadd.f32 %v223_v55, %v222_v57 }
 0x3d7   :  { %226 = vrot.lane.b32.xlu0 %v2302_v58, %s2145_s22 }
 0x3ee   :  { %v368_v63 = vpop.permute.xlu2 %367 }
 0x3ef   :  { %v372_v10 = vmul.f32 %v368_v63, %v362_v2 }
 0x3f1   :  { %v2353_v4 = vadd.f32 %v377_v15, %v372_v10 }
 0x3f6   :  { %v2373_v21 = vpop.permute.xlu2 %279 }
 0x3f7   :  { %v282_v23 = vadd.f32 %v2373_v21, %v267_v22 }
 0x438   :  { %v366_v9 = vpop.permute.xlu1 %365 }
 0x439   :  { %v371_v14 = vmul.f32 %v366_v9, %v361_v7 }
 0x43b   :  { %v2351_v16 = vadd.f32 %v376_v11, %v371_v14 }
 0x43d   :  { %v382_v17 = vrot.slane %v2351_v16, 1 }
 0x43f   :  { %v383_v53 = vsel %vm147_vm1, %v2353_v4, %v382_v17 }
 0x440   :  { %384 = vrot.lane.b32.xlu1 %v383_v53, %s2145_s22 }
 0x449   :  { %v227_v18 = vpop.permute.xlu0 %226 }
 0x44a   :  { %1964 = vmatmul.msk.f32.vlgmr.msrb.gmra.mxu1 %vm58_vm2, %v227_v18 }
 0x44b   :  { %636 = vmatpush.msrb.mxu1 %v2246_v42 }
 0x44d   :  { %637 = vmatpush.msrb.mxu1 %v2253_v43 }
 0x452   :  { %1967 = vmatmul.msk.f32.vlgmr.msra.gmra.mxu1 %vm58_vm2, %v227_v18 }
 0x453   :  { %780 = vmatpush.msra.mxu1 %v2175_v1 }
 0x455   :  { %781 = vmatpush.msra.mxu1 %v2184_v3 }
 0x4b2   :  { %v385_v52 = vpop.permute.xlu1 %384 }
 0x4b3   :  { %1966 = vmatmul.msk.f32.vlgmr.msrb.gmra.mxu0 %vm58_vm2, %v385_v52 }
 0x4b4   :  { %733 = vmatpush.msrb.mxu0 %v2309_v59 }
 0x4b6   :  { %734 = vmatpush.msrb.mxu0 %v2314_v60 }
 0x4bb   :  { %1970 = vmatmul.msk.f32.vlgmr.msra.gmra.mxu0 %vm58_vm2, %v385_v52 }
 0x4bc   :  { %942 = vmatpush.msra.mxu0 %v2319_v61 }
 0x4be   :  { %943 = vmatpush.msra.mxu0 %v2326_v62 }
 0x4c7   :  { %v247_v54 = vpop.f32.mrf.mxu1 }
 0x4c8   :  { %v270_v25 = vadd.f32 %v267_v22, %v247_v54 }
 0x4ca   :  { %v272_v28 = vadd.f32 %v2342_v6, %v270_v25 }
 0x4cc   :  { %v273_v32 = vmul.f32 0.5, %v272_v28 }
 0x4cf   :  { %v425_v19 = vpop.f32.mrf.mxu1 }
 0x4d0   :  { %v435_v20 = vadd.f32 %v425_v19, %v2276_v56 }
 0x4d2   :  { %437 = vrot.lane.b32.xlu0 %v435_v20, %s2146_s25 }
 0x4da   :  { %284 = vrot.lane.b32.xlu0 %v282_v23, %s2146_s25 }
 0x530   :  { %v405_v24 = vpop.f32.mrf.mxu0 }
 0x531   :  { %v428_v26 = vadd.f32 %v425_v19, %v405_v24  ;;  %v434_v23 = vadd.f32 %v405_v24, %v2241_v41 }
 0x533   :  { %v429_v27 = vadd.f32 %v428_v26, %v2241_v41 }
 0x535   :  { %v430_v29 = vmul.f32 0.5, %v429_v27  ;;  %v277_v27 = vadd.f32 %v2342_v6, %v247_v54 }
 0x537   :  { %2025 = vtanh.f32 %v430_v29 }
 0x538   :  { %v549_v30 = vpop.f32.mrf.mxu0  ;;  %2027 = vtanh.f32 %v273_v32 }
 0x539   :  { %v569_v33 = vadd.f32 %v549_v30, %v2203_v8  ;;  %v554_v55 = vrot.slane %v549_v30, 7  ;;  %v553_v7 = vrot.slane %v549_v30, 6 }
 0x53b   :  { %v572_v34 = vrot.slane %v569_v33, 7  ;;  %v571_v36 = vrot.slane %v569_v33, 6  ;;  %v558_v57 = vadd.f32 %v554_v55, %v2210_v13  ;;  %v557_v10 = vadd.f32 %v553_v7, %v2208_v12 }
 0x53d   :  { %v2026_v37 = vpop.eup %2025  ;;  %575 = vrot.lane.b32.xlu2 %v572_v34, %s2146_s25  ;;  %573 = vrot.lane.b32.xlu1 %v571_v36, %s2146_s25  ;;  %v560_v63 = vadd.f32 %v558_v57, %v2193_v5  ;;  %v559_v17 = vadd.f32 %v557_v10, %v2193_v5 }
 0x53e   :  { %v432_v38 = vadd.f32 1.0, %v2026_v37  ;;  %v2028_v45 = vpop.eup %2027 }
 0x53f   :  { %v275_v48 = vadd.f32 1.0, %v2028_v45  ;;  %v562_v0 = vmul.f32 0.5, %v560_v63  ;;  %v561_v53 = vmul.f32 0.5, %v559_v17 }
 0x540   :  { %v433_v44 = vmul.f32 0.5, %v432_v38 }
 0x541   :  { %v276_v49 = vmul.f32 0.5, %v275_v48  ;;  %2029 = vtanh.f32 %v562_v0 }
 0x542   :  { %2031 = vtanh.f32 %v561_v53  ;;  %v447_v54 = vsub.f32 1.0, %v433_v44 }
 0x543   :  { %v300_v55 = vmul.f32 0.0, %v276_v49 }
 0x544   :  { %v438_v46 = vpop.permute.xlu0 %437 }
 0x545   :  { %v440_v47 = vmul.f32 %v438_v46, %v433_v44  ;;  %v453_v46 = vmul.f32 %v433_v44, %v2302_v58  ;;  %v606_v58 = vrot.slane %v2353_v4, 7 }
 0x547   :  { %442 = vrot.lane.b32.xlu1 %v440_v47, %s2147_s0  ;;  %v2030_v2 = vpop.eup %2029 }
 0x548   :  { %v566_v9 = vadd.f32 1.0, %v2030_v2  ;;  %v2032_v18 = vpop.eup %2031  ;;  %v605_v2 = vrot.slane %v2351_v16, 7 }
 0x549   :  { %v565_v52 = vadd.f32 1.0, %v2032_v18 }
 0x54a   :  { %v568_v11 = vmul.f32 0.5, %v566_v9 }
 0x54b   :  { %v567_v19 = vmul.f32 0.5, %v565_v52 }
 0x54c   :  { %v285_v50 = vpop.permute.xlu0 %284  ;;  %v594_v44 = vsub.f32 1.0, %v568_v11  ;;  %v610_v9 = vmul.f32 %v606_v58, %v568_v11 }
 0x54d   :  { %v287_v51 = vmul.f32 %v285_v50, %v276_v49  ;;  %v294_v50 = vsub.f32 1.0, %v276_v49  ;;  %v593_v49 = vsub.f32 1.0, %v567_v19 }
 0x54f   :  { %289 = vrot.lane.b32.xlu1 %v287_v51, %s2147_s0 }
 0x597   :  { %v576_v14 = vpop.permute.xlu2 %575 }
 0x598   :  { %v580_v15 = vmul.f32 %v576_v14, %v568_v11 }
 0x59a   :  { %585 = vrot.lane.b32.xlu0 %v580_v15, %s2147_s0  ;;  %v609_v15 = vmul.f32 %v605_v2, %v567_v19 }
 0x5af   :  { %v574_v20 = vpop.permute.xlu1 %573 }
 0x5b0   :  { %v579_v22 = vmul.f32 %v574_v20, %v567_v19 }
 0x5b2   :  { %583 = vrot.lane.b32.xlu2 %v579_v22, %s2147_s0 }
 0x5b9   :  { %v443_v25 = vpop.permute.xlu1 %442 }
 0x5ba   :  { %v445_v26 = vadd.f32 %v443_v25, %v434_v23 }
 0x5bc   :  { %2033 = vtanh.f32 %v445_v26 }
 0x5c1   :  { %v290_v28 = vpop.permute.xlu1 %289 }
 0x5c2   :  { %v2034_v29 = vpop.eup %2033  ;;  %v292_v30 = vadd.f32 %v290_v28, %v277_v27 }
 0x5c3   :  { %449 = vrot.lane.b32.xlu2 %v2034_v29, %s2145_s22 }
 0x5c4   :  { %2035 = vtanh.f32 %v292_v30 }
 0x5ca   :  { %v2036_v32 = vpop.eup %2035 }
 0x5cb   :  { %296 = vrot.lane.b32.xlu2 %v2036_v32, %s2145_s22 }
 0x60c   :  { %v586_v33 = vpop.permute.xlu0 %585  ;;  %v584_v34 = vpop.permute.xlu2 %583 }
 0x60d   :  { %v590_v36 = vadd.f32 %v586_v33, %v2226_v35  ;;  %v589_v24 = vadd.f32 %v584_v34, %v2220_v31 }
 0x60f   :  { %2037 = vtanh.f32 %v590_v36 }
 0x610   :  { %2039 = vtanh.f32 %v589_v24 }
 0x615   :  { %v2038_v37 = vpop.eup %2037 }
 0x616   :  { %v2040_v38 = vpop.eup %2039  ;;  %599 = vrot.lane.b32.xlu1 %v2038_v37, %s2145_s22 }
 0x617   :  { %597 = vrot.lane.b32.xlu0 %v2040_v38, %s2145_s22 }
 0x61d   :  { %v450_v45 = vpop.permute.xlu2 %449 }
 0x61e   :  { %v452_v47 = vmul.f32 %v450_v45, %v447_v54 }
 0x620   :  { %v2399_v48 = vadd.f32 %v453_v46, %v452_v47 }
 0x622   :  { %456 = vrot.lane.b32.xlu0 %v2399_v48, %s2145_s22 }
 0x625   :  { %v297_v51 = vpop.permute.xlu2 %296 }
 0x626   :  { %v299_v57 = vmul.f32 %v297_v51, %v294_v50 }
 0x628   :  { %v2403_v63 = vadd.f32 %v300_v55, %v299_v57 }
 0x62a   :  { %481 = vrot.lane.b32.xlu2 %v2403_v63, %s2145_s22 }
 0x684   :  { %v482_v0 = vpop.permute.xlu2 %481 }
 0x685   :  { %1969 = vmatmul.msk.f32.vlgmr.msra.gmra.mxu3 %vm58_vm2, %v482_v0 }
 0x686   :  { %890 = vmatpush.msra.mxu3 %v2233_v39 }
 0x688   :  { %891 = vmatpush.msra.mxu3 %v2238_v40  ;;  %v600_v7 = vpop.permute.xlu1 %599 }
 0x689   :  { %v604_v10 = vmul.f32 %v600_v7, %v594_v44  ;;  %v598_v14 = vpop.permute.xlu0 %597 }
 0x68a   :  { %v603_v17 = vmul.f32 %v598_v14, %v593_v49 }
 0x68b   :  { %v2412_v53 = vadd.f32 %v610_v9, %v604_v10 }
 0x68c   :  { %v2414_v18 = vadd.f32 %v609_v15, %v603_v17 }
 0x68d   :  { %v616_v52 = vrot.slane %v2412_v53, 1 }
 0x68e   :  { %v615_v4 = vrot.slane %v2414_v18, 2 }
 0x690   :  { %v617_v20 = vsel %vm147_vm1, %v616_v52, %v615_v4 }
 0x691   :  { %618 = vrot.lane.b32.xlu1 %v617_v20, %s2145_s22 }
 0x694   :  { %v457_v16 = vpop.permute.xlu0 %456 }
 0x695   :  { %1968 = vmatmul.msk.f32.vlgmr.msra.gmra.mxu2 %vm58_vm2, %v457_v16 }
 0x696   :  { %870 = vmatpush.msra.mxu2 %v2246_v42 }
 0x698   :  { %871 = vmatpush.msra.mxu2 %v2253_v43 }
 0x69d   :  { %1972 = vmatmul.msk.f32.vlgmr.msrb.gmra.mxu2 %vm58_vm2, %v457_v16 }
 0x69e   :  { %1014 = vmatpush.msrb.mxu2 %v2175_v1 }
 0x6a0   :  { %1015 = vmatpush.msrb.mxu2 %v2184_v3 }
 0x703   :  { %v619_v11 = vpop.permute.xlu1 %618 }
 0x704   :  { %1971 = vmatmul.msk.f32.vlgmr.msrb.gmra.mxu1 %vm58_vm2, %v619_v11 }
 0x705   :  { %967 = vmatpush.msrb.mxu1 %v2309_v59 }
 0x707   :  { %968 = vmatpush.msrb.mxu1 %v2314_v60 }
 0x708   :  { %v502_v25 = vpop.f32.mrf.mxu3 }
 0x709   :  { %v512_v26 = vadd.f32 %v502_v25, %v2373_v21 }
 0x70c   :  { %1975 = vmatmul.msk.f32.vlgmr.msra.gmra.mxu1 %vm58_vm2, %v619_v11 }
 0x70d   :  { %1176 = vmatpush.msra.mxu1 %v2319_v61 }
 0x70f   :  { %1177 = vmatpush.msra.mxu1 %v2326_v62 }
 0x718   :  { %v477_v19 = vpop.f32.mrf.mxu2 }
 0x719   :  { %v505_v28 = vadd.f32 %v502_v25, %v477_v19 }
 0x71b   :  { %v506_v32 = vadd.f32 %v505_v28, %v2342_v6 }
 0x71d   :  { %v507_v36 = vmul.f32 0.5, %v506_v32  ;;  %v511_v32 = vadd.f32 %v477_v19, %v2342_v6 }
 0x720   :  { %v659_v22 = vpop.f32.mrf.mxu2 }
 0x721   :  { %v669_v23 = vadd.f32 %v659_v22, %v2276_v56 }
 0x723   :  { %671 = vrot.lane.b32.xlu0 %v669_v23, %s2146_s25 }
 0x72b   :  { %514 = vrot.lane.b32.xlu0 %v512_v26, %s2146_s25 }
 0x781   :  { %v639_v27 = vpop.f32.mrf.mxu1 }
 0x782   :  { %v662_v29 = vadd.f32 %v659_v22, %v639_v27  ;;  %v668_v28 = vadd.f32 %v639_v27, %v2241_v41 }
 0x784   :  { %v663_v30 = vadd.f32 %v662_v29, %v2241_v41 }
 0x786   :  { %v664_v33 = vmul.f32 0.5, %v663_v30 }
 0x788   :  { %2041 = vtanh.f32 %v664_v33 }
 0x789   :  { %v783_v34 = vpop.f32.mrf.mxu1  ;;  %2043 = vtanh.f32 %v507_v36 }
 0x78a   :  { %v803_v24 = vadd.f32 %v783_v34, %v2203_v8  ;;  %v788_v44 = vrot.slane %v783_v34, 6  ;;  %v787_v10 = vrot.slane %v783_v34, 5 }
 0x78c   :  { %v805_v37 = vrot.slane %v803_v24, 5  ;;  %v806_v38 = vrot.slane %v803_v24, 6  ;;  %v792_v2 = vadd.f32 %v788_v44, %v2210_v13  ;;  %v791_v15 = vadd.f32 %v787_v10, %v2208_v12 }
 0x78d   :  { %v839_v10 = vrot.slane %v2414_v18, 7 }
 0x78e   :  { %v2042_v54 = vpop.eup %2041  ;;  %807 = vrot.lane.b32.xlu1 %v805_v37, %s2146_s25  ;;  %809 = vrot.lane.b32.xlu2 %v806_v38, %s2146_s25  ;;  %v794_v7 = vadd.f32 %v792_v2, %v2193_v5  ;;  %v793_v20 = vadd.f32 %v791_v15, %v2193_v5 }
 0x78f   :  { %v666_v45 = vadd.f32 1.0, %v2042_v54  ;;  %v2044_v47 = vpop.eup %2043 }
 0x790   :  { %v509_v55 = vadd.f32 1.0, %v2044_v47  ;;  %v796_v49 = vmul.f32 0.5, %v794_v7  ;;  %v795_v16 = vmul.f32 0.5, %v793_v20 }
 0x791   :  { %v667_v46 = vmul.f32 0.5, %v666_v45 }
 0x792   :  { %v510_v57 = vmul.f32 0.5, %v509_v55  ;;  %2045 = vtanh.f32 %v796_v49 }
 0x793   :  { %2047 = vtanh.f32 %v795_v16  ;;  %v681_v19 = vsub.f32 1.0, %v667_v46 }
 0x794   :  { %v530_v2 = vmul.f32 %v510_v57, %v2403_v63 }
 0x795   :  { %v672_v50 = vpop.permute.xlu0 %671 }
 0x796   :  { %v674_v51 = vmul.f32 %v672_v50, %v667_v46 }
 0x798   :  { %676 = vrot.lane.b32.xlu1 %v674_v51, %s2147_s0  ;;  %v2046_v9 = vpop.eup %2045  ;;  %v687_v51 = vmul.f32 %v667_v46, %v2399_v48  ;;  %v840_v48 = vrot.slane %v2412_v53, 7 }
 0x799   :  { %v800_v14 = vadd.f32 1.0, %v2046_v9  ;;  %v2048_v11 = vpop.eup %2047 }
 0x79a   :  { %v799_v22 = vadd.f32 1.0, %v2048_v11 }
 0x79b   :  { %v802_v17 = vmul.f32 0.5, %v800_v14 }
 0x79c   :  { %v801_v23 = vmul.f32 0.5, %v799_v22 }
 0x79d   :  { %v515_v0 = vpop.permute.xlu0 %514  ;;  %v828_v46 = vsub.f32 1.0, %v802_v17 }
 0x79e   :  { %v517_v58 = vmul.f32 %v515_v0, %v510_v57  ;;  %v827_v63 = vsub.f32 1.0, %v801_v23 }
 0x7a0   :  { %519 = vrot.lane.b32.xlu1 %v517_v58, %s2147_s0  ;;  %v524_v58 = vsub.f32 1.0, %v510_v57  ;;  %v844_v57 = vmul.f32 %v840_v48, %v802_v17 }
 0x7e8   :  { %v810_v52 = vpop.permute.xlu2 %809 }
 0x7e9   :  { %v814_v4 = vmul.f32 %v810_v52, %v802_v17 }
 0x7eb   :  { %819 = vrot.lane.b32.xlu0 %v814_v4, %s2147_s0  ;;  %v843_v4 = vmul.f32 %v839_v10, %v801_v23 }
 0x800   :  { %v808_v25 = vpop.permute.xlu1 %807 }
 0x801   :  { %v813_v26 = vmul.f32 %v808_v25, %v801_v23 }
 0x803   :  { %817 = vrot.lane.b32.xlu2 %v813_v26, %s2147_s0 }
 0x80a   :  { %v677_v29 = vpop.permute.xlu1 %676 }
 0x80b   :  { %v679_v30 = vadd.f32 %v677_v29, %v668_v28 }
 0x80d   :  { %2049 = vtanh.f32 %v679_v30 }
 0x812   :  { %v520_v33 = vpop.permute.xlu1 %519 }
 0x813   :  { %v2050_v34 = vpop.eup %2049  ;;  %v522_v36 = vadd.f32 %v520_v33, %v511_v32 }
 0x814   :  { %683 = vrot.lane.b32.xlu2 %v2050_v34, %s2145_s22 }
 0x815   :  { %2051 = vtanh.f32 %v522_v36 }
 0x81b   :  { %v2052_v24 = vpop.eup %2051 }
 0x81c   :  { %526 = vrot.lane.b32.xlu2 %v2052_v24, %s2145_s22 }
 0x85d   :  { %v820_v37 = vpop.permute.xlu0 %819  ;;  %v818_v38 = vpop.permute.xlu2 %817 }
 0x85e   :  { %v824_v54 = vadd.f32 %v820_v37, %v2226_v35  ;;  %v823_v27 = vadd.f32 %v818_v38, %v2220_v31 }
 0x860   :  { %2053 = vtanh.f32 %v824_v54 }
 0x861   :  { %2055 = vtanh.f32 %v823_v27 }
 0x866   :  { %v2054_v45 = vpop.eup %2053 }
 0x867   :  { %v2056_v47 = vpop.eup %2055  ;;  %833 = vrot.lane.b32.xlu1 %v2054_v45, %s2145_s22 }
 0x868   :  { %831 = vrot.lane.b32.xlu0 %v2056_v47, %s2145_s22 }
 0x86e   :  { %v684_v50 = vpop.permute.xlu2 %683 }
 0x86f   :  { %v686_v55 = vmul.f32 %v684_v50, %v681_v19 }
 0x871   :  { %v2458_v0 = vadd.f32 %v687_v51, %v686_v55 }
 0x873   :  { %690 = vrot.lane.b32.xlu0 %v2458_v0, %s2145_s22 }
 0x876   :  { %v527_v44 = vpop.permute.xlu2 %526 }
 0x877   :  { %v529_v7 = vmul.f32 %v527_v44, %v524_v58 }
 0x879   :  { %v2463_v49 = vadd.f32 %v530_v2, %v529_v7 }
 0x87b   :  { %715 = vrot.lane.b32.xlu2 %v2463_v49, %s2145_s22 }
 0x8d5   :  { %v716_v9 = vpop.permute.xlu2 %715 }
 0x8d6   :  { %1974 = vmatmul.msk.f32.vlgmr.msrb.gmra.mxu0 %vm58_vm2, %v716_v9 }
 0x8d7   :  { %1124 = vmatpush.msrb.mxu0 %v2233_v39 }
 0x8d9   :  { %1125 = vmatpush.msrb.mxu0 %v2238_v40  ;;  %v834_v14 = vpop.permute.xlu1 %833 }
 0x8da   :  { %v838_v15 = vmul.f32 %v834_v14, %v828_v46  ;;  %v832_v52 = vpop.permute.xlu0 %831 }
 0x8db   :  { %v837_v20 = vmul.f32 %v832_v52, %v827_v63 }
 0x8dc   :  { %v2472_v16 = vadd.f32 %v844_v57, %v838_v15 }
 0x8dd   :  { %v2474_v11 = vadd.f32 %v843_v4, %v837_v20 }
 0x8de   :  { %v850_v22 = vrot.slane %v2472_v16, 2 }
 0x8df   :  { %v849_v53 = vrot.slane %v2474_v11, 3 }
 0x8e1   :  { %v851_v25 = vsel %vm147_vm1, %v850_v22, %v849_v53 }
 0x8e2   :  { %852 = vrot.lane.b32.xlu1 %v851_v25, %s2145_s22 }
 0x8e5   :  { %v691_v18 = vpop.permute.xlu0 %690 }
 0x8e6   :  { %1973 = vmatmul.msk.f32.vlgmr.msrb.gmra.mxu3 %vm58_vm2, %v691_v18 }
 0x8e7   :  { %1104 = vmatpush.msrb.mxu3 %v2246_v42 }
 0x8e9   :  { %1105 = vmatpush.msrb.mxu3 %v2253_v43 }
 0x8ee   :  { %1977 = vmatmul.msk.f32.vlgmr.msra.gmra.mxu3 %vm58_vm2, %v691_v18 }
 0x8ef   :  { %1248 = vmatpush.msra.mxu3 %v2175_v1 }
 0x8f1   :  { %1249 = vmatpush.msra.mxu3 %v2184_v3 }
 0x953   :  { %v736_v17 = vpop.f32.mrf.mxu0 }
 0x954   :  { %v746_v23 = vadd.f32 %v736_v17, %v2373_v21  ;;  %v853_v26 = vpop.permute.xlu1 %852 }
 0x955   :  { %1976 = vmatmul.msk.f32.vlgmr.msra.gmra.mxu2 %vm58_vm2, %v853_v26 }
 0x956   :  { %748 = vrot.lane.b32.xlu1 %v746_v23, %s2146_s25  ;;  %1201 = vmatpush.msra.mxu2 %v2309_v59 }
 0x958   :  { %1202 = vmatpush.msra.mxu2 %v2314_v60 }
 0x95d   :  { %1980 = vmatmul.msk.f32.vlgmr.msrb.gmra.mxu2 %vm58_vm2, %v853_v26 }
 0x95e   :  { %1410 = vmatpush.msrb.mxu2 %v2319_v61 }
 0x960   :  { %1411 = vmatpush.msrb.mxu2 %v2326_v62 }
 0x969   :  { %v711_v1 = vpop.f32.mrf.mxu3 }
 0x96a   :  { %v739_v29 = vadd.f32 %v736_v17, %v711_v1  ;;  %v745_v25 = vadd.f32 %v711_v1, %v2342_v6 }
 0x96c   :  { %v740_v30 = vadd.f32 %v739_v29, %v2342_v6 }
 0x96e   :  { %v741_v32 = vmul.f32 0.5, %v740_v30 }
 0x970   :  { %2057 = vtanh.f32 %v741_v32 }
 0x971   :  { %v893_v3 = vpop.f32.mrf.mxu3 }
 0x972   :  { %v903_v28 = vadd.f32 %v893_v3, %v2276_v56 }
 0x974   :  { %905 = vrot.lane.b32.xlu0 %v903_v28, %s2146_s25 }
 0x976   :  { %v2058_v54 = vpop.eup %2057 }
 0x977   :  { %v743_v19 = vadd.f32 1.0, %v2058_v54 }
 0x979   :  { %v744_v44 = vmul.f32 0.5, %v743_v19 }
 0x9c8   :  { %v749_v55 = vpop.permute.xlu1 %748 }
 0x9c9   :  { %v751_v7 = vmul.f32 %v749_v55, %v744_v44 }
 0x9d8   :  { %v873_v33 = vpop.f32.mrf.mxu2 }
 0x9d9   :  { %v896_v34 = vadd.f32 %v893_v3, %v873_v33  ;;  %v902_v32 = vadd.f32 %v873_v33, %v2241_v41 }
 0x9db   :  { %v897_v36 = vadd.f32 %v896_v34, %v2241_v41 }
 0x9dd   :  { %v898_v24 = vmul.f32 0.5, %v897_v36 }
 0x9df   :  { %2059 = vtanh.f32 %v898_v24 }
 0x9e0   :  { %v1017_v37 = vpop.f32.mrf.mxu2 }
 0x9e1   :  { %v1037_v38 = vadd.f32 %v1017_v37, %v2203_v8  ;;  %v1021_v9 = vrot.slane %v1017_v37, 4  ;;  %v1022_v63 = vrot.slane %v1017_v37, 5 }
 0x9e3   :  { %v1040_v27 = vrot.slane %v1037_v38, 5  ;;  %v1039_v45 = vrot.slane %v1037_v38, 4  ;;  %v1025_v48 = vadd.f32 %v1021_v9, %v2208_v12  ;;  %v1026_v15 = vadd.f32 %v1022_v63, %v2210_v13 }
 0x9e5   :  { %v2060_v47 = vpop.eup %2059  ;;  %1043 = vrot.lane.b32.xlu0 %v1040_v27, %s2146_s25  ;;  %1041 = vrot.lane.b32.xlu2 %v1039_v45, %s2146_s25  ;;  %v1027_v46 = vadd.f32 %v1025_v48, %v2193_v5  ;;  %v1028_v22 = vadd.f32 %v1026_v15, %v2193_v5  ;;  %v758_v45 = vsub.f32 1.0, %v744_v44 }
 0x9e6   :  { %v900_v50 = vadd.f32 1.0, %v2060_v47  ;;  %v906_v51 = vpop.permute.xlu0 %905 }
 0x9e7   :  { %v1029_v10 = vmul.f32 0.5, %v1027_v46  ;;  %v1030_v53 = vmul.f32 0.5, %v1028_v22 }
 0x9e8   :  { %v901_v58 = vmul.f32 0.5, %v900_v50  ;;  %v764_v50 = vmul.f32 %v744_v44, %v2463_v49  ;;  %v1074_v49 = vrot.slane %v2472_v16, 7 }
 0x9e9   :  { %2061 = vtanh.f32 %v1029_v10 }
 0x9ea   :  { %v908_v2 = vmul.f32 %v906_v51, %v901_v58  ;;  %2063 = vtanh.f32 %v1030_v53  ;;  %v915_v54 = vsub.f32 1.0, %v901_v58  ;;  %v921_v47 = vmul.f32 %v901_v58, %v2458_v0 }
 0x9eb   :  { %v1073_v58 = vrot.slane %v2474_v11, 7 }
 0x9ec   :  { %910 = vrot.lane.b32.xlu1 %v908_v2, %s2147_s0 }
 0x9ed   :  { %753 = vrot.lane.b32.xlu2 %v751_v7, %s2147_s0 }
 0x9ef   :  { %v2062_v14 = vpop.eup %2061 }
 0x9f0   :  { %v1033_v57 = vadd.f32 1.0, %v2062_v14  ;;  %v2064_v23 = vpop.eup %2063 }
 0x9f1   :  { %v1034_v3 = vadd.f32 1.0, %v2064_v23 }
 0x9f2   :  { %v1035_v52 = vmul.f32 0.5, %v1033_v57 }
 0x9f3   :  { %v1036_v28 = vmul.f32 0.5, %v1034_v3 }
 0x9f4   :  { %v1061_v44 = vsub.f32 1.0, %v1035_v52  ;;  %v1077_v14 = vmul.f32 %v1073_v58, %v1035_v52 }
 0x9f5   :  { %v1062_v48 = vsub.f32 1.0, %v1036_v28  ;;  %v1078_v57 = vmul.f32 %v1074_v49, %v1036_v28 }
 0xa3f   :  { %v1042_v4 = vpop.permute.xlu2 %1041 }
 0xa40   :  { %v1047_v20 = vmul.f32 %v1042_v4, %v1035_v52  ;;  %v2547_v52 = vld [vmem:[%s2787_s1 + $0x10] sm:$0xff] }
 0xa42   :  { %1051 = vrot.lane.b32.xlu0 %v1047_v20, %s2147_s0 }
 0xa47   :  { %v754_v18 = vpop.permute.xlu2 %753 }
 0xa48   :  { %v756_v17 = vadd.f32 %v754_v18, %v745_v25  ;;  %v2553_v18 = vld [vmem:[%s2787_s1 + $0x8] sm:$0xff] }
 0xa4a   :  { %2065 = vtanh.f32 %v756_v17 }
 0xa50   :  { %v2066_v26 = vpop.eup %2065 }
 0xa51   :  { %760 = vrot.lane.b32.xlu0 %v2066_v26, %s2145_s22 }
 0xa57   :  { %v1044_v29 = vpop.permute.xlu0 %1043 }
 0xa58   :  { %v1048_v30 = vmul.f32 %v1044_v29, %v1036_v28 }
 0xa5a   :  { %1053 = vrot.lane.b32.xlu1 %v1048_v30, %s2147_s0 }
 0xa5e   :  { %v911_v34 = vpop.permute.xlu1 %910 }
 0xa5f   :  { %v913_v36 = vadd.f32 %v911_v34, %v902_v32 }
 0xa61   :  { %2067 = vtanh.f32 %v913_v36 }
 0xa67   :  { %v2068_v1 = vpop.eup %2067 }
 0xa68   :  { %917 = vrot.lane.b32.xlu2 %v2068_v1, %s2145_s22 }
 0xab4   :  { %v1052_v24 = vpop.permute.xlu0 %1051 }
 0xab5   :  { %v1057_v37 = vadd.f32 %v1052_v24, %v2220_v31 }
 0xab7   :  { %2069 = vtanh.f32 %v1057_v37 }
 0xabd   :  { %v2070_v38 = vpop.eup %2069 }
 0xabe   :  { %1065 = vrot.lane.b32.xlu1 %v2070_v38, %s2145_s22 }
 0xac2   :  { %v918_v27 = vpop.permute.xlu2 %917 }
 0xac3   :  { %v920_v19 = vmul.f32 %v918_v27, %v915_v54  ;;  %v761_v33 = vpop.permute.xlu0 %760 }
 0xac4   :  { %v763_v51 = vmul.f32 %v761_v33, %v758_v45 }
 0xac5   :  { %v2517_v55 = vadd.f32 %v921_v47, %v920_v19 }
 0xac6   :  { %v2519_v2 = vadd.f32 %v764_v50, %v763_v51 }
 0xac7   :  { %924 = vrot.lane.b32.xlu0 %v2517_v55, %s2145_s22 }
 0xac8   :  { %949 = vrot.lane.b32.xlu1 %v2519_v2, %s2145_s22 }
 0xacc   :  { %v1054_v7 = vpop.permute.xlu1 %1053 }
 0xacd   :  { %v1058_v9 = vadd.f32 %v1054_v7, %v2226_v35 }
 0xacf   :  { %2071 = vtanh.f32 %v1058_v9 }
 0xad5   :  { %v2072_v0 = vpop.eup %2071 }
 0xad6   :  { %1067 = vrot.lane.b32.xlu2 %v2072_v0, %s2145_s22 }
 0xb30   :  { %v1066_v46 = vpop.permute.xlu1 %1065  ;;  %v1068_v10 = vpop.permute.xlu2 %1067 }
 0xb31   :  { %v1071_v63 = vmul.f32 %v1066_v46, %v1061_v44  ;;  %v1072_v15 = vmul.f32 %v1068_v10, %v1062_v48 }
 0xb33   :  { %v2529_v4 = vadd.f32 %v1077_v14, %v1071_v63  ;;  %v2531_v20 = vadd.f32 %v1078_v57, %v1072_v15 }
 0xb35   :  { %v1083_v22 = vrot.slane %v2529_v4, 4  ;;  %v1084_v53 = vrot.slane %v2531_v20, 3 }
 0xb37   :  { %v1085_v16 = vsel %vm147_vm1, %v1084_v53, %v1083_v22 }
 0xb38   :  { %1086 = vrot.lane.b32.xlu2 %v1085_v16, %s2145_s22 }
 0xb39   :  { %v925_v11 = vpop.permute.xlu0 %924 }
 0xb3a   :  { %v950_v25 = vpop.permute.xlu1 %949  ;;  %1978 = vmatmul.msk.f32.vlgmr.msra.gmra.mxu0 %vm58_vm2, %v925_v11 }
 0xb3b   :  { %1979 = vmatmul.msk.f32.vlgmr.msrb.gmra.mxu1 %vm58_vm2, %v950_v25  ;;  %1338 = vmatpush.msra.mxu0 %v2246_v42 }
 0xb3c   :  { %1358 = vmatpush.msrb.mxu1 %v2233_v39 }
 0xb3d   :  { %1339 = vmatpush.msra.mxu0 %v2253_v43 }
 0xb3e   :  { %1359 = vmatpush.msrb.mxu1 %v2238_v40 }
 0xb42   :  { %1982 = vmatmul.msk.f32.vlgmr.msrb.gmra.mxu0 %vm58_vm2, %v925_v11 }
 0xb43   :  { %1482 = vmatpush.msrb.mxu0 %v2547_v52 }
 0xb45   :  { %1483 = vmatpush.msrb.mxu0 %v2553_v18 }
 0xb92   :  { %v1087_v39 = vpop.permute.xlu2 %1086 }
 0xb93   :  { %1981 = vmatmul.msk.f32.vlgmr.msrb.gmra.mxu3 %vm58_vm2, %v1087_v39 }
 0xb94   :  { %1435 = vmatpush.msrb.mxu3 %v2309_v59 }
 0xb96   :  { %1436 = vmatpush.msrb.mxu3 %v2314_v60 }
 0xb9b   :  { %1985 = vmatmul.msk.f32.vlgmr.msra.gmra.mxu3 %vm58_vm2, %v1087_v39 }
 0xb9c   :  { %1644 = vmatpush.msra.mxu3 %v2319_v61 }
 0xb9e   :  { %1645 = vmatpush.msra.mxu3 %v2326_v62 }
 0xbb7   :  { %v945_v40 = vpop.f32.mrf.mxu0 }
 0xbb8   :  { %v970_v42 = vpop.f32.mrf.mxu1 }
 0xbb9   :  { %v980_v43 = vadd.f32 %v970_v42, %v2373_v21  ;;  %v973_v59 = vadd.f32 %v970_v42, %v945_v40  ;;  %v979_v42 = vadd.f32 %v945_v40, %v2342_v6 }
 0xbbb   :  { %982 = vrot.lane.b32.xlu0 %v980_v43, %s2146_s25  ;;  %v974_v60 = vadd.f32 %v973_v59, %v2342_v6 }
 0xbbd   :  { %v975_v28 = vmul.f32 0.5, %v974_v60 }
 0xbbf   :  { %v1127_v17 = vpop.f32.mrf.mxu0  ;;  %2073 = vtanh.f32 %v975_v28 }
 0xbc0   :  { %v1137_v23 = vadd.f32 %v1127_v17, %v2276_v56 }
 0xbc2   :  { %1139 = vrot.lane.b32.xlu1 %v1137_v23, %s2146_s25 }
 0xbc5   :  { %v2074_v36 = vpop.eup %2073 }
 0xbc6   :  { %v977_v1 = vadd.f32 1.0, %v2074_v36 }
 0xbc8   :  { %v978_v37 = vmul.f32 0.5, %v977_v1 }
 0xc16   :  { %v1107_v26 = vpop.f32.mrf.mxu3 }
 0xc17   :  { %v1130_v3 = vadd.f32 %v1127_v17, %v1107_v26  ;;  %v1136_v57 = vadd.f32 %v1107_v26, %v2241_v41 }
 0xc19   :  { %v1131_v61 = vadd.f32 %v1130_v3, %v2241_v41  ;;  %v992_v3 = vsub.f32 1.0, %v978_v37 }
 0xc1b   :  { %v1132_v34 = vmul.f32 0.5, %v1131_v61  ;;  %v998_v61 = vmul.f32 %v978_v37, %v2519_v2 }
 0xc1d   :  { %2075 = vtanh.f32 %v1132_v34 }
 0xc1e   :  { %v1251_v62 = vpop.f32.mrf.mxu3 }
 0xc1f   :  { %v1271_v29 = vadd.f32 %v1251_v62, %v2203_v8  ;;  %v1255_v33 = vrot.slane %v1251_v62, 3  ;;  %v1256_v0 = vrot.slane %v1251_v62, 4 }
 0xc21   :  { %v1274_v30 = vrot.slane %v1271_v29, 4  ;;  %v1273_v32 = vrot.slane %v1271_v29, 3  ;;  %v1259_v50 = vadd.f32 %v1255_v33, %v2208_v12  ;;  %v1260_v58 = vadd.f32 %v1256_v0, %v2210_v13 }
 0xc23   :  { %1277 = vrot.lane.b32.xlu0 %v1274_v30, %s2146_s25  ;;  %1275 = vrot.lane.b32.xlu2 %v1273_v32, %s2146_s25  ;;  %v2076_v24 = vpop.eup %2075  ;;  %v1261_v51 = vadd.f32 %v1259_v50, %v2193_v5  ;;  %v1262_v10 = vadd.f32 %v1260_v58, %v2193_v5  ;;  %v2617_v58 = vld [vmem:[%s2787_s1 + $0x28] sm:$0xff] }
 0xc24   :  { %v1134_v27 = vadd.f32 1.0, %v2076_v24 }
 0xc25   :  { %v1263_v7 = vmul.f32 0.5, %v1261_v51  ;;  %v1264_v14 = vmul.f32 0.5, %v1262_v10 }
 0xc26   :  { %v1135_v45 = vmul.f32 0.5, %v1134_v27 }
 0xc27   :  { %2077 = vtanh.f32 %v1263_v7 }
 0xc28   :  { %2079 = vtanh.f32 %v1264_v14  ;;  %v1149_v32 = vsub.f32 1.0, %v1135_v45  ;;  %v1155_v36 = vmul.f32 %v1135_v45, %v2517_v55  ;;  %v2640_v14 = vld [vmem:[%s2787_s1 + $0x50] sm:$0xff] }
 0xc2d   :  { %v983_v38 = vpop.permute.xlu0 %982  ;;  %v2078_v9 = vpop.eup %2077 }
 0xc2e   :  { %v985_v54 = vmul.f32 %v983_v38, %v978_v37  ;;  %v1267_v49 = vadd.f32 1.0, %v2078_v9  ;;  %v2080_v63 = vpop.eup %2079  ;;  %v1307_v37 = vrot.slane %v2529_v4, 7  ;;  %v1308_v38 = vrot.slane %v2531_v20, 7 }
 0xc2f   :  { %v1268_v15 = vadd.f32 1.0, %v2080_v63  ;;  %v2646_v63 = vld [vmem:[%s2787_s1 + $0x48] sm:$0xff] }
 0xc30   :  { %987 = vrot.lane.b32.xlu1 %v985_v54, %s2147_s0  ;;  %v1269_v44 = vmul.f32 0.5, %v1267_v49  ;;  %v2611_v49 = vld [vmem:[%s2787_s1 + $0x30] sm:$0xff] }
 0xc31   :  { %v1270_v16 = vmul.f32 0.5, %v1268_v15 }
 0xc32   :  { %v1295_v54 = vsub.f32 1.0, %v1269_v44  ;;  %v1311_v33 = vmul.f32 %v1307_v37, %v1269_v44 }
 0xc33   :  { %v1296_v27 = vsub.f32 1.0, %v1270_v16  ;;  %v1312_v55 = vmul.f32 %v1308_v38, %v1270_v16 }
 0xc34   :  { %v1140_v47 = vpop.permute.xlu1 %1139 }
 0xc35   :  { %v1142_v19 = vmul.f32 %v1140_v47, %v1135_v45 }
 0xc37   :  { %1144 = vrot.lane.b32.xlu2 %v1142_v19, %s2147_s0 }
 0xc7d   :  { %v1276_v48 = vpop.permute.xlu2 %1275 }
 0xc7e   :  { %v1281_v46 = vmul.f32 %v1276_v48, %v1269_v44  ;;  %v2624_v48 = vld [vmem:[%s2787_s1 + $0x20] sm:$0xff] }
 0xc80   :  { %1285 = vrot.lane.b32.xlu0 %v1281_v46, %s2147_s0  ;;  %v2630_v46 = vld [vmem:[%s2787_s1 + $0x18] sm:$0xff] }
 0xc91   :  { %v1145_v22 = vpop.permute.xlu2 %1144 }
 0xc92   :  { %v1147_v53 = vadd.f32 %v1145_v22, %v1136_v57 }
 0xc94   :  { %2081 = vtanh.f32 %v1147_v53 }
 0xc95   :  { %v1278_v11 = vpop.permute.xlu0 %1277 }
 0xc96   :  { %v1282_v25 = vmul.f32 %v1278_v11, %v1270_v16 }
 0xc98   :  { %1287 = vrot.lane.b32.xlu1 %v1282_v25, %s2147_s0 }
 0xc9a   :  { %v2082_v39 = vpop.eup %2081 }
 0xc9b   :  { %1151 = vrot.lane.b32.xlu0 %v2082_v39, %s2145_s22 }
 0xca2   :  { %v988_v43 = vpop.permute.xlu1 %987 }
 0xca3   :  { %v990_v17 = vadd.f32 %v988_v43, %v979_v42 }
 0xca5   :  { %2083 = vtanh.f32 %v990_v17 }
 0xcab   :  { %v2084_v23 = vpop.eup %2083 }
 0xcac   :  { %994 = vrot.lane.b32.xlu2 %v2084_v23, %s2145_s22 }
 0xcf2   :  { %v1286_v59 = vpop.permute.xlu0 %1285 }
 0xcf3   :  { %v1291_v26 = vadd.f32 %v1286_v59, %v2220_v31 }
 0xcf5   :  { %2085 = vtanh.f32 %v1291_v26 }
 0xcfb   :  { %v2086_v60 = vpop.eup %2085 }
 0xcfc   :  { %1299 = vrot.lane.b32.xlu1 %v2086_v60, %s2145_s22 }
 0xd06   :  { %v995_v28 = vpop.permute.xlu2 %994 }
 0xd07   :  { %v997_v62 = vmul.f32 %v995_v28, %v992_v3 }
 0xd09   :  { %v2586_v29 = vadd.f32 %v998_v61, %v997_v62 }
 0xd0a   :  { %v1288_v40 = vpop.permute.xlu1 %1287 }
 0xd0b   :  { %v1292_v30 = vadd.f32 %v1288_v40, %v2226_v35  ;;  %1183 = vrot.lane.b32.xlu1 %v2586_v29, %s2145_s22 }
 0xd0d   :  { %2087 = vtanh.f32 %v1292_v30  ;;  %v1152_v34 = vpop.permute.xlu0 %1151 }
 0xd0e   :  { %v1154_v1 = vmul.f32 %v1152_v34, %v1149_v32 }
 0xd10   :  { %v2592_v24 = vadd.f32 %v1155_v36, %v1154_v1 }
 0xd12   :  { %1158 = vrot.lane.b32.xlu0 %v2592_v24, %s2145_s22 }
 0xd13   :  { %v2088_v2 = vpop.eup %2087 }
 0xd14   :  { %1301 = vrot.lane.b32.xlu2 %v2088_v2, %s2145_s22 }
 0xd6e   :  { %v1300_v47 = vpop.permute.xlu1 %1299  ;;  %v1302_v19 = vpop.permute.xlu2 %1301 }
 0xd6f   :  { %v1305_v50 = vmul.f32 %v1300_v47, %v1295_v54  ;;  %v1306_v45 = vmul.f32 %v1302_v19, %v1296_v27 }
 0xd71   :  { %v2599_v51 = vadd.f32 %v1311_v33, %v1305_v50  ;;  %v2601_v7 = vadd.f32 %v1312_v55, %v1306_v45 }
 0xd73   :  { %v1317_v9 = vrot.slane %v2599_v51, 5  ;;  %v1318_v0 = vrot.slane %v2601_v7, 4 }
 0xd75   :  { %v1319_v4 = vsel %vm147_vm1, %v1318_v0, %v1317_v9 }
 0xd76   :  { %1320 = vrot.lane.b32.xlu2 %v1319_v4, %s2145_s22 }
 0xd7d   :  { %v1184_v20 = vpop.permute.xlu1 %1183 }
 0xd7e   :  { %1984 = vmatmul.msk.f32.vlgmr.msra.gmra.mxu2 %vm58_vm2, %v1184_v20 }
 0xd7f   :  { %1592 = vmatpush.msra.mxu2 %v2611_v49 }
 0xd81   :  { %1593 = vmatpush.msra.mxu2 %v2617_v58 }
 0xd84   :  { %v1159_v44 = vpop.permute.xlu0 %1158 }
 0xd85   :  { %1983 = vmatmul.msk.f32.vlgmr.msra.gmra.mxu1 %vm58_vm2, %v1159_v44 }
 0xd86   :  { %1572 = vmatpush.msra.mxu1 %v2624_v48 }
 0xd88   :  { %1573 = vmatpush.msra.mxu1 %v2630_v46 }
 0xd8d   :  { %1987 = vmatmul.msk.f32.vlgmr.msrb.gmra.mxu1 %vm58_vm2, %v1159_v44 }
 0xd8e   :  { %1716 = vmatpush.msrb.mxu1 %v2547_v52  ;;  %v2141_v52 = vld [vmem:[%s2787_s1 + $0x40] sm:$0xff] }
 0xd90   :  { %1717 = vmatpush.msrb.mxu1 %v2553_v18  ;;  %v2142_v18 = vld [vmem:[%s2787_s1 + $0x38] sm:$0xff] }
 0xdd0   :  { %v1321_v10 = vpop.permute.xlu2 %1320 }
 0xdd1   :  { %1986 = vmatmul.msk.f32.vlgmr.msra.gmra.mxu0 %vm58_vm2, %v1321_v10 }
 0xdd2   :  { %1669 = vmatpush.msra.mxu0 %v2640_v14 }
 0xdd4   :  { %1670 = vmatpush.msra.mxu0 %v2646_v63 }
 0xdd9   :  { %1990 = vmatmul.msk.f32.vlgmr.msrb.gmra.mxu0 %vm58_vm2, %v1321_v10 }
 0xdda   :  { %1878 = vmatpush.msrb.mxu0 %v2141_v52 }
 0xddc   :  { %1879 = vmatpush.msrb.mxu0 %v2142_v18 }
 0xe01   :  { %v1204_v57 = vpop.f32.mrf.mxu2 }
 0xe02   :  { %v1214_v15 = vadd.f32 %v1204_v57, %v2373_v21  ;;  %v1179_v22 = vpop.f32.mrf.mxu1 }
 0xe03   :  { %v1207_v17 = vadd.f32 %v1204_v57, %v1179_v22 }
 0xe04   :  { %1216 = vrot.lane.b32.xlu0 %v1214_v15, %s2146_s25 }
 0xe05   :  { %v1208_v23 = vadd.f32 %v1207_v17, %v2342_v6 }
 0xe07   :  { %v1209_v59 = vmul.f32 0.5, %v1208_v23 }
 0xe09   :  { %2089 = vtanh.f32 %v1209_v59 }
 0xe0a   :  { %v1361_v53 = vpop.f32.mrf.mxu1 }
 0xe0b   :  { %v1371_v16 = vadd.f32 %v1361_v53, %v2276_v56 }
 0xe0d   :  { %1373 = vrot.lane.b32.xlu1 %v1371_v16, %s2146_s25 }
 0xe0f   :  { %v2090_v28 = vpop.eup %2089 }
 0xe10   :  { %v1211_v61 = vadd.f32 1.0, %v2090_v28 }
 0xe12   :  { %v1212_v62 = vmul.f32 0.5, %v1211_v61 }
 0xe14   :  { %v1232_v28 = vmul.f32 %v1212_v62, %v2586_v29  ;;  %v1542_v29 = vrot.slane %v2601_v7, 7 }
 0xe4e   :  { %v1341_v11 = vpop.f32.mrf.mxu0 }
 0xe4f   :  { %v1364_v26 = vadd.f32 %v1361_v53, %v1341_v11  ;;  %v1370_v57 = vadd.f32 %v1341_v11, %v2241_v41 }
 0xe51   :  { %v1365_v60 = vadd.f32 %v1364_v26, %v2241_v41 }
 0xe53   :  { %v1366_v3 = vmul.f32 0.5, %v1365_v60 }
 0xe55   :  { %2091 = vtanh.f32 %v1366_v3 }
 0xe56   :  { %v1485_v25 = vpop.f32.mrf.mxu0 }
 0xe57   :  { %v1505_v39 = vadd.f32 %v1485_v25, %v2203_v8  ;;  %v1489_v37 = vrot.slane %v1485_v25, 2  ;;  %v1490_v19 = vrot.slane %v1485_v25, 3  ;;  %v1213_v25 = vadd.f32 %v1179_v22, %v2342_v6 }
 0xe58   :  { %v1226_v22 = vsub.f32 1.0, %v1212_v62 }
 0xe59   :  { %v1508_v42 = vrot.slane %v1505_v39, 3  ;;  %v1507_v43 = vrot.slane %v1505_v39, 2  ;;  %v1493_v38 = vadd.f32 %v1489_v37, %v2208_v12  ;;  %v1494_v50 = vadd.f32 %v1490_v19, %v2210_v13 }
 0xe5a   :  { %v1541_v37 = vrot.slane %v2599_v51, 7 }
 0xe5b   :  { %1511 = vrot.lane.b32.xlu0 %v1508_v42, %s2146_s25  ;;  %1509 = vrot.lane.b32.xlu2 %v1507_v43, %s2146_s25  ;;  %v2092_v30 = vpop.eup %2091  ;;  %v1495_v54 = vadd.f32 %v1493_v38, %v2193_v5  ;;  %v1496_v0 = vadd.f32 %v1494_v50, %v2193_v5 }
 0xe5c   :  { %v1368_v34 = vadd.f32 1.0, %v2092_v30 }
 0xe5d   :  { %v1497_v27 = vmul.f32 0.5, %v1495_v54  ;;  %v1498_v4 = vmul.f32 0.5, %v1496_v0 }
 0xe5e   :  { %v1369_v36 = vmul.f32 0.5, %v1368_v34 }
 0xe5f   :  { %2093 = vtanh.f32 %v1497_v27 }
 0xe60   :  { %2095 = vtanh.f32 %v1498_v4  ;;  %v1383_v30 = vsub.f32 1.0, %v1369_v36  ;;  %v1389_v34 = vmul.f32 %v1369_v36, %v2592_v24 }
 0xe65   :  { %v2094_v47 = vpop.eup %2093 }
 0xe66   :  { %v1501_v33 = vadd.f32 1.0, %v2094_v47  ;;  %v2096_v20 = vpop.eup %2095 }
 0xe67   :  { %v1502_v44 = vadd.f32 1.0, %v2096_v20 }
 0xe68   :  { %v1503_v55 = vmul.f32 0.5, %v1501_v33 }
 0xe69   :  { %v1504_v10 = vmul.f32 0.5, %v1502_v44 }
 0xe6a   :  { %v1545_v47 = vmul.f32 %v1541_v37, %v1503_v55 }
 0xe6b   :  { %v1530_v38 = vsub.f32 1.0, %v1504_v10  ;;  %v1546_v33 = vmul.f32 %v1542_v29, %v1504_v10 }
 0xe76   :  { %v1217_v40 = vpop.permute.xlu0 %1216 }
 0xe77   :  { %v1219_v32 = vmul.f32 %v1217_v40, %v1212_v62  ;;  %v1529_v62 = vsub.f32 1.0, %v1503_v55 }
 0xe79   :  { %1221 = vrot.lane.b32.xlu1 %v1219_v32, %s2147_s0 }
 0xe7f   :  { %v1374_v1 = vpop.permute.xlu1 %1373 }
 0xe80   :  { %v1376_v2 = vmul.f32 %v1374_v1, %v1369_v36 }
 0xe82   :  { %1378 = vrot.lane.b32.xlu2 %v1376_v2, %s2147_s0 }
 0xeb5   :  { %v1510_v45 = vpop.permute.xlu2 %1509 }
 0xeb6   :  { %v1515_v9 = vmul.f32 %v1510_v45, %v1503_v55 }
 0xeb8   :  { %1519 = vrot.lane.b32.xlu0 %v1515_v9, %s2147_s0 }
 0xecd   :  { %v1512_v52 = vpop.permute.xlu0 %1511 }
 0xece   :  { %v1516_v18 = vmul.f32 %v1512_v52, %v1504_v10 }
 0xed0   :  { %1521 = vrot.lane.b32.xlu1 %v1516_v18, %s2147_s0 }
 0xedc   :  { %v1379_v15 = vpop.permute.xlu2 %1378 }
 0xedd   :  { %v1381_v53 = vadd.f32 %v1379_v15, %v1370_v57 }
 0xedf   :  { %2097 = vtanh.f32 %v1381_v53 }
 0xee5   :  { %v2098_v16 = vpop.eup %2097 }
 0xee6   :  { %1385 = vrot.lane.b32.xlu0 %v2098_v16, %s2145_s22 }
 0xeeb   :  { %v1222_v39 = vpop.permute.xlu1 %1221 }
 0xeec   :  { %v1224_v42 = vadd.f32 %v1222_v39, %v1213_v25 }
 0xeee   :  { %2099 = vtanh.f32 %v1224_v42 }
 0xef4   :  { %v2100_v43 = vpop.eup %2099 }
 0xef5   :  { %1228 = vrot.lane.b32.xlu2 %v2100_v43, %s2145_s22 }
 0xf2a   :  { %v1520_v17 = vpop.permute.xlu0 %1519 }
 0xf2b   :  { %v1525_v23 = vadd.f32 %v1520_v17, %v2220_v31 }
 0xf2d   :  { %2101 = vtanh.f32 %v1525_v23 }
 0xf33   :  { %v2102_v59 = vpop.eup %2101 }
 0xf34   :  { %1533 = vrot.lane.b32.xlu1 %v2102_v59, %s2145_s22 }
 0xf42   :  { %v1522_v11 = vpop.permute.xlu1 %1521 }
 0xf43   :  { %v1526_v26 = vadd.f32 %v1522_v11, %v2226_v35 }
 0xf45   :  { %2103 = vtanh.f32 %v1526_v26 }
 0xf4b   :  { %v2104_v60 = vpop.eup %2103 }
 0xf4c   :  { %1535 = vrot.lane.b32.xlu2 %v2104_v60, %s2145_s22 }
 0xf4f   :  { %v1229_v3 = vpop.permute.xlu2 %1228 }
 0xf50   :  { %v1231_v61 = vmul.f32 %v1229_v3, %v1226_v22 }
 0xf52   :  { %v2682_v40 = vadd.f32 %v1232_v28, %v1231_v61 }
 0xf54   :  { %1417 = vrot.lane.b32.xlu0 %v2682_v40, %s2145_s22 }
 0xf58   :  { %v1386_v32 = vpop.permute.xlu0 %1385 }
 0xf59   :  { %v1388_v1 = vmul.f32 %v1386_v32, %v1383_v30 }
 0xf5b   :  { %v2687_v2 = vadd.f32 %v1389_v34, %v1388_v1 }
 0xf5d   :  { %1392 = vrot.lane.b32.xlu1 %v2687_v2, %s2145_s22 }
 0xfa6   :  { %v1534_v54 = vpop.permute.xlu1 %1533  ;;  %v1536_v27 = vpop.permute.xlu2 %1535 }
 0xfa7   :  { %v1539_v19 = vmul.f32 %v1534_v54, %v1529_v62  ;;  %v1540_v50 = vmul.f32 %v1536_v27, %v1530_v38 }
 0xfa9   :  { %v2693_v45 = vadd.f32 %v1545_v47, %v1539_v19  ;;  %v2695_v24 = vadd.f32 %v1546_v33, %v1540_v50 }
 0xfab   :  { %v1551_v36 = vrot.slane %v2693_v45, 6  ;;  %v1552_v9 = vrot.slane %v2695_v24, 5 }
 0xfad   :  { %v1553_v51 = vsel %vm147_vm1, %v1552_v9, %v1551_v36 }
 0xfae   :  { %1554 = vrot.lane.b32.xlu2 %v1553_v51, %s2145_s22 }
 0xfc6   :  { %v1418_v7 = vpop.permute.xlu0 %1417 }
 0xfc7   :  { %1989 = vmatmul.msk.f32.vlgmr.msrb.gmra.mxu3 %vm58_vm2, %v1418_v7 }
 0xfc8   :  { %1826 = vmatpush.msrb.mxu3 %v2611_v49 }
 0xfca   :  { %1827 = vmatpush.msrb.mxu3 %v2617_v58 }
 0xfcf   :  { %v1393_v55 = vpop.permute.xlu1 %1392 }
 0xfd0   :  { %1988 = vmatmul.msk.f32.vlgmr.msrb.gmra.mxu2 %vm58_vm2, %v1393_v55 }
 0xfd1   :  { %1806 = vmatpush.msrb.mxu2 %v2624_v48 }
 0xfd3   :  { %1807 = vmatpush.msrb.mxu2 %v2630_v46 }
 0xfd8   :  { %1992 = vmatmul.msk.f32.vlgmr.msra.gmra.mxu2 %vm58_vm2, %v1393_v55 }
0x1008   :  { %v1555_v0 = vpop.permute.xlu2 %1554 }
0x1009   :  { %1991 = vmatmul.msk.f32.vlgmr.msra.gmra.mxu1 %vm58_vm2, %v1555_v0 }
0x100a   :  { %1903 = vmatpush.msra.mxu1 %v2640_v14 }
0x100c   :  { %1904 = vmatpush.msra.mxu1 %v2646_v63 }
0x1011   :  { %1995 = vmatmul.msk.f32.vlgmr.msrb.gmra.mxu1 %vm58_vm2, %v1555_v0 }
0x104a   :  { %v1438_v49 = vpop.f32.mrf.mxu3 }
0x104b   :  { %v1448_v58 = vadd.f32 %v1438_v49, %v2373_v21 }
0x104d   :  { %1450 = vrot.lane.b32.xlu0 %v1448_v58, %s2146_s25 }
0x1053   :  { %v1413_v4 = vpop.f32.mrf.mxu2 }
0x1054   :  { %v1441_v63 = vadd.f32 %v1438_v49, %v1413_v4  ;;  %v1447_v36 = vadd.f32 %v1413_v4, %v2342_v6 }
0x1056   :  { %v1442_v18 = vadd.f32 %v1441_v63, %v2342_v6 }
0x1058   :  { %v1443_v57 = vmul.f32 0.5, %v1442_v18 }
0x105a   :  { %2105 = vtanh.f32 %v1443_v57  ;;  %v1775_v57 = vrot.slane %v2693_v45, 7 }
0x105b   :  { %v1595_v48 = vpop.f32.mrf.mxu2 }
0x105c   :  { %v1605_v46 = vadd.f32 %v1595_v48, %v2276_v56 }
0x105e   :  { %1607 = vrot.lane.b32.xlu1 %v1605_v46, %s2146_s25 }
0x1060   :  { %v2106_v53 = vpop.eup %2105 }
0x1061   :  { %v1445_v25 = vadd.f32 1.0, %v2106_v53 }
0x1063   :  { %v1446_v42 = vmul.f32 0.5, %v1445_v25 }
0x1065   :  { %v1460_v46 = vsub.f32 1.0, %v1446_v42 }
0x1086   :  { %v1575_v20 = vpop.f32.mrf.mxu1 }
0x1087   :  { %v1598_v15 = vadd.f32 %v1595_v48, %v1575_v20  ;;  %v1604_v33 = vadd.f32 %v1575_v20, %v2241_v41 }
0x1089   :  { %v1599_v16 = vadd.f32 %v1598_v15, %v2241_v41 }
0x108b   :  { %v1600_v39 = vmul.f32 0.5, %v1599_v16 }
0x108d   :  { %2107 = vtanh.f32 %v1600_v39 }
0x108e   :  { %v1719_v44 = vpop.f32.mrf.mxu1 }
0x108f   :  { %v1739_v10 = vadd.f32 %v1719_v44, %v2203_v8  ;;  %v1723_v59 = vrot.slane %v1719_v44, 1  ;;  %v1724_v30 = vrot.slane %v1719_v44, 2  ;;  %v1466_v44 = vmul.f32 %v1446_v42, %v2682_v40 }
0x1090   :  { %v1776_v40 = vrot.slane %v2695_v24, 7 }
0x1091   :  { %v1742_v14 = vrot.slane %v1739_v10, 2  ;;  %v1741_v52 = vrot.slane %v1739_v10, 1  ;;  %v1727_v22 = vadd.f32 %v1723_v59, %v2208_v12  ;;  %v1728_v34 = vadd.f32 %v1724_v30, %v2210_v13 }
0x1093   :  { %1745 = vrot.lane.b32.xlu0 %v1742_v14, %s2146_s25  ;;  %1743 = vrot.lane.b32.xlu2 %v1741_v52, %s2146_s25  ;;  %v2108_v17 = vpop.eup %2107  ;;  %v1729_v3 = vadd.f32 %v1727_v22, %v2193_v5  ;;  %v1730_v62 = vadd.f32 %v1728_v34, %v2193_v5 }
0x1094   :  { %v1602_v23 = vadd.f32 1.0, %v2108_v17 }
0x1095   :  { %v1731_v28 = vmul.f32 0.5, %v1729_v3  ;;  %v1732_v38 = vmul.f32 0.5, %v1730_v62 }
0x1096   :  { %v1603_v11 = vmul.f32 0.5, %v1602_v23 }
0x1097   :  { %2109 = vtanh.f32 %v1731_v28 }
0x1098   :  { %2111 = vtanh.f32 %v1732_v38  ;;  %v1623_v63 = vmul.f32 %v1603_v11, %v2687_v2 }
0x109d   :  { %v2110_v61 = vpop.eup %2109 }
0x109e   :  { %v1735_v32 = vadd.f32 1.0, %v2110_v61  ;;  %v2112_v12 = vpop.eup %2111 }
0x109f   :  { %v1736_v54 = vadd.f32 1.0, %v2112_v12 }
0x10a0   :  { %v1737_v1 = vmul.f32 0.5, %v1735_v32 }
0x10a1   :  { %v1738_v27 = vmul.f32 0.5, %v1736_v54 }
0x10a2   :  { %v1763_v15 = vsub.f32 1.0, %v1737_v1  ;;  %v1779_v39 = vmul.f32 %v1775_v57, %v1737_v1 }
0x10a3   :  { %v1764_v53 = vsub.f32 1.0, %v1738_v27 }
0x10bf   :  { %v1451_v43 = vpop.permute.xlu0 %1450 }
0x10c0   :  { %v1453_v8 = vmul.f32 %v1451_v43, %v1446_v42  ;;  %v1780_v43 = vmul.f32 %v1776_v40, %v1738_v27 }
0x10c2   :  { %1455 = vrot.lane.b32.xlu1 %v1453_v8, %s2147_s0 }
0x10d0   :  { %v1608_v26 = vpop.permute.xlu1 %1607 }
0x10d1   :  { %v1610_v60 = vmul.f32 %v1608_v26, %v1603_v11 }
0x10d3   :  { %1612 = vrot.lane.b32.xlu2 %v1610_v60, %s2147_s0 }
0x10ed   :  { %v1744_v37 = vpop.permute.xlu2 %1743 }
0x10ee   :  { %v1749_v29 = vmul.f32 %v1744_v37, %v1737_v1 }
0x10f0   :  { %1753 = vrot.lane.b32.xlu0 %v1749_v29, %s2147_s0 }
0x1105   :  { %v1746_v47 = vpop.permute.xlu0 %1745 }
0x1106   :  { %v1750_v19 = vmul.f32 %v1746_v47, %v1738_v27 }
0x1108   :  { %1755 = vrot.lane.b32.xlu1 %v1750_v19, %s2147_s0 }
0x112d   :  { %v1613_v50 = vpop.permute.xlu2 %1612 }
0x112e   :  { %v1615_v13 = vadd.f32 %v1613_v50, %v1604_v33 }
0x1130   :  { %2113 = vtanh.f32 %v1615_v13 }
0x1134   :  { %v1456_v9 = vpop.permute.xlu1 %1455 }
0x1135   :  { %v1458_v5 = vadd.f32 %v1456_v9, %v1447_v36 }
0x1136   :  { %v2114_v51 = vpop.eup %2113 }
0x1137   :  { %2115 = vtanh.f32 %v1458_v5  ;;  %1619 = vrot.lane.b32.xlu0 %v2114_v51, %s2145_s22 }
0x113d   :  { %v2116_v7 = vpop.eup %2115 }
0x113e   :  { %1462 = vrot.lane.b32.xlu2 %v2116_v7, %s2145_s22 }
0x1162   :  { %v1754_v55 = vpop.permute.xlu0 %1753 }
0x1163   :  { %v1759_v0 = vadd.f32 %v1754_v55, %v2220_v31  ;;  %v1617_v31 = vsub.f32 1.0, %v1603_v11 }
0x1165   :  { %2117 = vtanh.f32 %v1759_v0 }
0x116b   :  { %v2118_v49 = vpop.eup %2117 }
0x116c   :  { %1767 = vrot.lane.b32.xlu1 %v2118_v49, %s2145_s22 }
0x117a   :  { %v1756_v58 = vpop.permute.xlu1 %1755 }
0x117b   :  { %v1760_v48 = vadd.f32 %v1756_v58, %v2226_v35 }
0x117d   :  { %2119 = vtanh.f32 %v1760_v48 }
0x1183   :  { %v2120_v4 = vpop.eup %2119 }
0x1184   :  { %1769 = vrot.lane.b32.xlu2 %v2120_v4, %s2145_s22 }
0x1198   :  { %v1463_v20 = vpop.permute.xlu2 %1462 }
0x1199   :  { %v1465_v10 = vmul.f32 %v1463_v20, %v1460_v46 }
0x119b   :  { %v2738_v14 = vadd.f32 %v1466_v44, %v1465_v10 }
0x119d   :  { %1651 = vrot.lane.b32.xlu0 %v2738_v14, %s2145_s22 }
0x11a9   :  { %v1620_v52 = vpop.permute.xlu0 %1619 }
0x11aa   :  { %v1622_v18 = vmul.f32 %v1620_v52, %v1617_v31 }
0x11ac   :  { %v2743_v35 = vadd.f32 %v1623_v63, %v1622_v18 }
0x11ae   :  { %1626 = vrot.lane.b32.xlu1 %v2743_v35, %s2145_s22 }
0x11de   :  { %v1768_v16 = vpop.permute.xlu1 %1767  ;;  %v1770_v25 = vpop.permute.xlu2 %1769 }
0x11df   :  { %v1773_v42 = vmul.f32 %v1768_v16, %v1763_v15  ;;  %v1774_v8 = vmul.f32 %v1770_v25, %v1764_v53 }
0x11e1   :  { %v1781_v17 = vadd.f32 %v1779_v39, %v1773_v42  ;;  %v1782_v2 = vadd.f32 %v1780_v43, %v1774_v8  ;;  %v2143_v8 = vld [vmem:[%s2789_s2] sm:$0xf] }
0x11e3   :  { %v1785_v23 = vrot.slane %v1781_v17, 7  ;;  %v1786_v59 = vrot.slane %v1782_v2, 6 }
0x11e5   :  { %v1787_v11 = vsel %vm147_vm1, %v1786_v59, %v1785_v23 }
0x11e6   :  { %1788 = vrot.lane.b32.xlu2 %v1787_v11, %s2145_s22 }
0x120f   :  { %v1652_v26 = vpop.permute.xlu0 %1651 }
0x1210   :  { %1994 = vmatmul.msk.f32.vlgmr.msra.gmra.mxu0 %vm58_vm2, %v1652_v26 }
0x1220   :  { %v1627_v45 = vpop.permute.xlu1 %1626 }
0x1221   :  { %1993 = vmatmul.msk.f32.vlgmr.msra.gmra.mxu3 %vm58_vm2, %v1627_v45 }
0x1229   :  { %1997 = vmatmul.msk.f32.vlgmr.msrb.gmra.mxu3 %vm58_vm2, %v1627_v45 }
0x1240   :  { %v1789_v24 = vpop.permute.xlu2 %1788 }
0x1241   :  { %1996 = vmatmul.msk.f32.vlgmr.msrb.gmra.mxu2 %vm58_vm2, %v1789_v24 }
0x128d   :  { %v1672_v60 = vpop.f32.mrf.mxu0 }
0x128e   :  { %v1682_v22 = vadd.f32 %v1672_v60, %v2373_v21 }
0x1290   :  { %1684 = vrot.lane.b32.xlu0 %v1682_v22, %s2146_s25 }
0x12a4   :  { %v1647_v3 = vpop.f32.mrf.mxu3 }
0x12a5   :  { %v1675_v30 = vadd.f32 %v1672_v60, %v1647_v3  ;;  %v1681_v36 = vadd.f32 %v1647_v3, %v2342_v6 }
0x12a7   :  { %v1676_v32 = vadd.f32 %v1675_v30, %v2342_v6 }
0x12a9   :  { %v1677_v34 = vmul.f32 0.5, %v1676_v32 }
0x12ab   :  { %2121 = vtanh.f32 %v1677_v34 }
0x12ac   :  { %v1829_v28 = vpop.f32.mrf.mxu3 }
0x12ad   :  { %v1839_v61 = vadd.f32 %v1829_v28, %v2276_v56 }
0x12af   :  { %1841 = vrot.lane.b32.xlu1 %v1839_v61, %s2146_s25 }
0x12b1   :  { %v2122_v1 = vpop.eup %2121 }
0x12b2   :  { %v1679_v37 = vadd.f32 1.0, %v2122_v1 }
0x12b4   :  { %v1680_v29 = vmul.f32 0.5, %v1679_v37 }
0x12b6   :  { %v1694_v58 = vsub.f32 1.0, %v1680_v29  ;;  %v1700_v4 = vmul.f32 %v1680_v29, %v2738_v14 }
0x12c4   :  { %v1809_v12 = vpop.f32.mrf.mxu2 }
0x12c5   :  { %v1832_v54 = vadd.f32 %v1829_v28, %v1809_v12  ;;  %v1838_v7 = vadd.f32 %v1809_v12, %v2241_v41 }
0x12c7   :  { %v1833_v27 = vadd.f32 %v1832_v54, %v2241_v41 }
0x12c9   :  { %v1834_v47 = vmul.f32 0.5, %v1833_v27 }
0x12cb   :  { %2123 = vtanh.f32 %v1834_v47 }
0x12d1   :  { %v2124_v56 = vpop.eup %2123 }
0x12d2   :  { %v1836_v19 = vadd.f32 1.0, %v2124_v56 }
0x12d4   :  { %v1837_v33 = vmul.f32 0.5, %v1836_v19 }
0x12d6   :  { %v1851_v44 = vsub.f32 1.0, %v1837_v33  ;;  %v1857_v31 = vmul.f32 %v1837_v33, %v2743_v35 }
0x1302   :  { %v1685_v62 = vpop.permute.xlu0 %1684 }
0x1303   :  { %v1687_v38 = vmul.f32 %v1685_v62, %v1680_v29 }
0x1305   :  { %1689 = vrot.lane.b32.xlu2 %v1687_v38, %s2147_s0 }
0x1321   :  { %v1842_v50 = vpop.permute.xlu1 %1841 }
0x1322   :  { %v1844_v13 = vmul.f32 %v1842_v50, %v1837_v33 }
0x1324   :  { %1846 = vrot.lane.b32.xlu0 %v1844_v13, %s2147_s0 }
0x135f   :  { %v1690_v9 = vpop.permute.xlu2 %1689 }
0x1360   :  { %v1692_v5 = vadd.f32 %v1690_v9, %v1681_v36 }
0x1362   :  { %2125 = vtanh.f32 %v1692_v5 }
0x1368   :  { %v2126_v51 = vpop.eup %2125 }
0x1369   :  { %1696 = vrot.lane.b32.xlu1 %v2126_v51, %s2145_s22 }
0x1396   :  { %v1847_v55 = vpop.permute.xlu0 %1846 }
0x1397   :  { %v1849_v0 = vadd.f32 %v1847_v55, %v1838_v7 }
0x1399   :  { %2127 = vtanh.f32 %v1849_v0 }
0x139f   :  { %v2128_v49 = vpop.eup %2127 }
0x13a0   :  { %1853 = vrot.lane.b32.xlu2 %v2128_v49, %s2145_s22 }
0x13db   :  { %v1697_v48 = vpop.permute.xlu1 %1696 }
0x13dc   :  { %v1699_v46 = vmul.f32 %v1697_v48, %v1694_v58 }
0x13de   :  { %v1701_v20 = vadd.f32 %v1700_v4, %v1699_v46 }
0x13e0   :  { %1885 = vrot.lane.b32.xlu0 %v1701_v20, %s2145_s22 }
0x13fa   :  { %v1854_v10 = vpop.permute.xlu2 %1853 }
0x13fb   :  { %v1856_v52 = vmul.f32 %v1854_v10, %v1851_v44 }
0x13fd   :  { %v1858_v41 = vadd.f32 %v1857_v31, %v1856_v52 }
0x13ff   :  { %1860 = vrot.lane.b32.xlu1 %v1858_v41, %s2145_s22 }
0x1452   :  { %v1886_v63 = vpop.permute.xlu0 %1885 }
0x1453   :  { %1999 = vmatmul.msk.f32.vlgmr.msra.gmra.mxu1 %vm58_vm2, %v1886_v63 }
0x1471   :  { %v1861_v18 = vpop.permute.xlu1 %1860 }
0x1472   :  { %1998 = vmatmul.msk.f32.vlgmr.msrb.gmra.mxu0 %vm58_vm2, %v1861_v18 }
0x14d0   :  { %v1906_v57 = vpop.f32.mrf.mxu1 }
0x14d1   :  { %v1916_v14 = vadd.f32 %v1906_v57, %v2373_v21  ;;  %v1936_v21 = vperm.slane %v2143_v8, 3 }
0x14d3   :  { %1918 = vrot.lane.b32.xlu2 %v1916_v14, %s2146_s25 }
0x14db   :  { %1938 = vrot.lane.b32.xlu2 %v1936_v21, %s2148_s11 }
0x14ef   :  { %v1881_v40 = vpop.f32.mrf.mxu0 }
0x14f0   :  { %v1909_v15 = vadd.f32 %v1906_v57, %v1881_v40  ;;  %v1915_v17 = vadd.f32 %v1881_v40, %v2342_v6 }
0x14f2   :  { %v1910_v53 = vadd.f32 %v1909_v15, %v2342_v6 }
0x14f4   :  { %v1911_v35 = vmul.f32 0.5, %v1910_v53 }
0x14f6   :  { %2129 = vtanh.f32 %v1911_v35 }
0x14fc   :  { %v2130_v16 = vpop.eup %2129 }
0x14fd   :  { %v1913_v25 = vadd.f32 1.0, %v2130_v16 }
0x14ff   :  { %v1914_v39 = vmul.f32 0.5, %v1913_v25 }
0x1501   :  { %v1928_v11 = vsub.f32 1.0, %v1914_v39  ;;  %v1934_v24 = vmul.f32 %v1914_v39, %v1701_v20 }
0x152d   :  { %v1919_v42 = vpop.permute.xlu2 %1918 }
0x152e   :  { %v1921_v43 = vmul.f32 %v1919_v42, %v1914_v39 }
0x1530   :  { %1923 = vrot.lane.b32.xlu0 %v1921_v43, %s2147_s0 }
0x1535   :  { %v1939_v60 = vpop.permute.xlu2 %1938 }
0x15a2   :  { %v1924_v2 = vpop.permute.xlu0 %1923 }
0x15a3   :  { %v1926_v23 = vadd.f32 %v1924_v2, %v1915_v17 }
0x15a5   :  { %2131 = vtanh.f32 %v1926_v23 }
0x15ab   :  { %v2132_v59 = vpop.eup %2131 }
0x15ac   :  { %1930 = vrot.lane.b32.xlu1 %v2132_v59, %s2145_s22 }
0x161e   :  { %v1931_v26 = vpop.permute.xlu1 %1930 }
0x161f   :  { %v1933_v45 = vmul.f32 %v1931_v26, %v1928_v11 }
0x1621   :  { %v1935_v22 = vadd.f32 %v1934_v24, %v1933_v45 }
0x1623   :  { %v1941_v3 = vmul.f32 %v1939_v60, %v1935_v22 }
0x1625   :  { %1943 = vrot.lane.b32.xlu0 %v1941_v3, %s2145_s22 }
0x1697   :  { %v1944_v28 = vpop.permute.xlu0 %1943 }
0x1698   :  { %v1947_v61 = vsel %vm1946_vm3, %v1944_v28, 0.0 }
0x1699   :  { %1948 = vadd.xlane.f32.xlu1 %v1947_v61 }
0x170c   :  { %v1949_v6 = vpop.xlane.xlu1 %1948 }
0x170d   :  { %v1950_v30 = vadd.f32 %v1949_v6, %v1936_v21 }
0x170f   :  { %1952 = vrot.lane.b32.xlu2 %v1950_v30, %s2145_s22 }
0x1769   :  { %v1953_v32 = vpop.permute.xlu2 %1952 }
0x176a   :  { %1956 = vst.msk [vmem:[%s2790_s3] sm:$0x3] %vm1955_vm4, %v1953_v32 }

</bundles_post_ra>
